<compile_context>
chip_gen: v7x
topology: tpu7x:2x2x1
jax: 0.10.0
libtpu: 0.0.40
codegen_flags: <defaults>
</compile_context>

<pallas_src>
import math

import jax
import jax.numpy as jnp
import numpy as np
from jax.experimental import pallas as pl
from jax.experimental.pallas import tpu as pltpu

# ---- scaled-down "distilbert-base-uncased" hyper-parameters -----------------
VOCAB = 100
MAX_POS = 16
HIDDEN = 32          # (real model: 768)
N_HEADS = 4          # (real model: 12)
HEAD_DIM = HIDDEN // N_HEADS
N_LAYERS = 2         # (real model: 6)
FFN = 64             # (real model: 3072)
EPS = 1e-12          # DistilBERT LayerNorm eps
NEG_INF = -1e9
HEAD_PAD = 128       # lane-dense padded width of the regression-head output

B = 2                # batch
S = 8                # sequence length

# ---- packed-parameter layout -------------------------------------------------
# bf16 weight slab  w_a: (N_LAYERS + 1, HIDDEN, WSLAB_W)
#   per-layer block l < N_LAYERS:  cols [0:96)=Wqkv  [96:128)=Wo  [128:192)=W1
#   "global" block  l = N_LAYERS:  cols [0:128)=head weight padded to 128 lanes
QKV_OFF = 0
WO_OFF = 3 * HIDDEN                      # 96
W1_OFF = WO_OFF + HIDDEN                 # 128 (lane-tile aligned)
WSLAB_W = W1_OFF + FFN                   # 192
# f32 bias/LN slab  slab: (N_LAYERS + 1, 8, 128)
#   per-layer rows: 0=bqkv(96) 1=bo(32) 2=b1(64) 3=b2(32) 4=ln1g 5=ln1b 6=ln2g 7=ln2b
#   global rows   : 0=emb_ln_g 1=emb_ln_b 2=b_head(padded to 128)
SLAB_ROWS = 8

# advisory cost estimate (lets XLA schedule neighbours around the custom call)
_COST_FLOPS = (N_LAYERS * 2 * B * S * HIDDEN * (3 * HIDDEN + HIDDEN + 2 * FFN)
               + N_LAYERS * 2 * 2 * (N_HEADS * B) * S * S * HEAD_DIM
               + 2 * B * S * HIDDEN * HEAD_PAD)
_COST_TRANS = N_LAYERS * (N_HEADS * B * S * S + B * S * FFN) + 5 * B * S
_COST_BYTES = (B * S * HIDDEN * 4 + B * S * 4
               + (N_LAYERS + 1) * HIDDEN * WSLAB_W * 2
               + N_LAYERS * FFN * HIDDEN * 2
               + (N_LAYERS + 1) * SLAB_ROWS * 128 * 4
               + B * S * HEAD_PAD * 4)


# ---- math helpers (used identically inside the kernel and in the reference) --
def _layer_norm(x, gamma, beta):
    mu = jnp.mean(x, axis=-1, keepdims=True)
    var = jnp.mean(jnp.square(x - mu), axis=-1, keepdims=True)
    return (x - mu) * jax.lax.rsqrt(var + EPS) * gamma + beta


def _gelu(x):
    # TODO(synk): real DistilBERT uses exact erf-GELU; the tanh approximation is
    # used here (kernel AND reference) to guarantee Mosaic lowering via EUP tanh.
    c = math.sqrt(2.0 / math.pi)
    return 0.5 * x * (1.0 + jnp.tanh(c * (x + 0.044715 * x * x * x)))


# ---- Pallas kernel -----------------------------------------------------------
def encoder_kernel(x_ref, mask_ref, w_a_ref, w2_ref, slab_ref, out_ref):
    """Whole batch in one invocation: embedding LN + N_LAYERS encoder layers +
    fused Linear(H->3, zero-padded to 128 lanes) + ReLU regression head."""
    GW = N_LAYERS                                   # "global" parameter block
    x = x_ref[...]                                                    # (B*S, H) f32

    # additive attention-mask bias, hoisted out of the layer loop and laid out
    # head-major (row index = h*B + b) to match the head-stacked batch axis.
    neg = jnp.where(mask_ref[...] == 0.0,
                    jnp.float32(NEG_INF), jnp.float32(0.0))           # (B, 1, S)
    neg = jnp.concatenate([neg] * N_HEADS, axis=0)                    # (NH*B, 1, S)

    # embedding LayerNorm
    x = _layer_norm(x, slab_ref[GW, 0:1, :HIDDEN], slab_ref[GW, 1:2, :HIDDEN])

    for l in range(N_LAYERS):
        # --- multi-head self-attention, all heads batched --------------------
        qkv = jnp.dot(x.astype(jnp.bfloat16),
                      w_a_ref[l, :, QKV_OFF:QKV_OFF + 3 * HIDDEN],
                      preferred_element_type=jnp.float32) \
            + slab_ref[l, 0:1, :3 * HIDDEN]                           # (B*S, 3H)

        # stack the per-head 8-lane chunks onto the leading batch axis
        def head_major(base):
            parts = [qkv[:, base + h * HEAD_DIM: base + (h + 1) * HEAD_DIM]
                     .reshape(B, S, HEAD_DIM) for h in range(N_HEADS)]
            return jnp.concatenate(parts, axis=0)                     # (NH*B, S, dh)

        qh = head_major(0)            # 1/sqrt(head_dim) already folded into Wq
        kh = head_major(HIDDEN)
        vh = head_major(2 * HIDDEN)

        sc = jnp.einsum('bqd,bkd->bqk', qh, kh,
                        preferred_element_type=jnp.float32) + neg     # (NH*B, S, S)
        m = jnp.max(sc, axis=-1, keepdims=True)
        e = jnp.exp(sc - m)
        p = e * pl.reciprocal(jnp.sum(e, axis=-1, keepdims=True), approx=True)
        ctx = jnp.einsum('bqk,bkd->bqd', p, vh,
                         preferred_element_type=jnp.float32)          # (NH*B, S, dh)
        ctx = jnp.concatenate(
            [ctx[h * B:(h + 1) * B].reshape(B * S, HEAD_DIM)
             for h in range(N_HEADS)], axis=-1)                       # (B*S, H)

        attn = jnp.dot(ctx.astype(jnp.bfloat16),
                       w_a_ref[l, :, WO_OFF:WO_OFF + HIDDEN],
                       preferred_element_type=jnp.float32) \
             + slab_ref[l, 1:2, :HIDDEN]
        x = _layer_norm(attn + x, slab_ref[l, 4:5, :HIDDEN], slab_ref[l, 5:6, :HIDDEN])

        # --- feed-forward -----------------------------------------------------
        hdn = jnp.dot(x.astype(jnp.bfloat16),
                      w_a_ref[l, :, W1_OFF:W1_OFF + FFN],
                      preferred_element_type=jnp.float32) \
            + slab_ref[l, 2:3, :FFN]
        hdn = _gelu(hdn)
        hdn = jnp.dot(hdn.astype(jnp.bfloat16), w2_ref[l],
                      preferred_element_type=jnp.float32) \
            + slab_ref[l, 3:4, :HIDDEN]
        x = _layer_norm(hdn + x, slab_ref[l, 6:7, :HIDDEN], slab_ref[l, 7:8, :HIDDEN])

    # --- fused regression head on ALL rows: one dense (B*S, 128) store --------
    y = jnp.dot(x.astype(jnp.bfloat16), w_a_ref[GW, :, :HEAD_PAD],
                preferred_element_type=jnp.float32) + slab_ref[GW, 2:3, :]
    out_ref[...] = jnp.maximum(y, 0.0).astype(out_ref.dtype)          # (B*S, 128)


# ---- wrapper -----------------------------------------------------------------
def prepare_kernel_params(P):
    """One-time weight fusion / scale-fold / packing into two slabs (at init)."""
    s = 1.0 / math.sqrt(HEAD_DIM)
    L = N_LAYERS

    # bf16 weight slab
    w_a = jnp.zeros((L + 1, HIDDEN, WSLAB_W), jnp.float32)
    wqkv = jnp.concatenate([P['wq'] * s, P['wk'], P['wv']], axis=-1)      # (L, H, 3H)
    w_a = w_a.at[:L, :, QKV_OFF:QKV_OFF + 3 * HIDDEN].set(wqkv)
    w_a = w_a.at[:L, :, WO_OFF:WO_OFF + HIDDEN].set(P['wo'])
    w_a = w_a.at[:L, :, W1_OFF:W1_OFF + FFN].set(P['w1'])
    w_a = w_a.at[L, :, :3].set(P['w_head'])          # head weight, lanes 3:128 stay 0
    w_a = w_a.astype(jnp.bfloat16)
    w2 = P['w2'].astype(jnp.bfloat16)                                     # (L, FFN, H)

    # f32 bias / LayerNorm slab
    slab = jnp.zeros((L + 1, SLAB_ROWS, 128), jnp.float32)
    bqkv = jnp.concatenate([P['bq'] * s, P['bk'], P['bv']], axis=-1)      # (L, 1, 3H)
    slab = slab.at[:L, 0, :3 * HIDDEN].set(bqkv[:, 0, :])
    slab = slab.at[:L, 1, :HIDDEN].set(P['bo'][:, 0, :])
    slab = slab.at[:L, 2, :FFN].set(P['b1'][:, 0, :])
    slab = slab.at[:L, 3, :HIDDEN].set(P['b2'][:, 0, :])
    slab = slab.at[:L, 4, :HIDDEN].set(P['ln1_g'][:, 0, :])
    slab = slab.at[:L, 5, :HIDDEN].set(P['ln1_b'][:, 0, :])
    slab = slab.at[:L, 6, :HIDDEN].set(P['ln2_g'][:, 0, :])
    slab = slab.at[:L, 7, :HIDDEN].set(P['ln2_b'][:, 0, :])
    slab = slab.at[L, 0, :HIDDEN].set(P['emb_ln_g'][0])
    slab = slab.at[L, 1, :HIDDEN].set(P['emb_ln_b'][0])
    slab = slab.at[L, 2, :3].set(P['b_head'][0])

    return dict(word_emb=P['word_emb'], pos_emb=P['pos_emb'],
                w_a=w_a, w2=w2, slab=slab)


def auto_transformer_forward(input_ids, attention_mask, KP):
    # embedding gather + positional add (plain-JAX glue)
    x = KP['word_emb'][input_ids] + KP['pos_emb'][:S][None, :, :]      # (B, S, H)
    x = x.reshape(B * S, HIDDEN)
    mask_f = attention_mask.astype(jnp.float32).reshape(B, 1, S)

    # Single invocation, 5 operands, everything resident in VMEM.
    vmem = pl.BlockSpec(memory_space=pltpu.MemorySpace.VMEM)
    out = pl.pallas_call(
        encoder_kernel,
        out_shape=jax.ShapeDtypeStruct((B * S, HEAD_PAD), jnp.float32),
        in_specs=[vmem] * 5,
        out_specs=vmem,
        compiler_params=pltpu.CompilerParams(
            # far above the ~0.2 MiB used here; the knob matters on the
            # real-size streaming path (see scale-up plan above).
            vmem_limit_bytes=16 * 1024 * 1024),
        cost_estimate=pl.CostEstimate(
            flops=_COST_FLOPS, transcendentals=_COST_TRANS,
            bytes_accessed=_COST_BYTES),
    )(x, mask_f, KP['w_a'], KP['w2'], KP['slab'])

    # CLS rows {0, S, ...} and the 3 real output columns are sliced here,
    # keeping the in-kernel store a single dense unmasked tile.
    return out.reshape(B, S, HEAD_PAD)[:, 0, :3]                       # (B, 3)


# ---- pure-JAX reference (same math, unfused f32 parameters, no Pallas) --------
def reference_forward(input_ids, attention_mask, P):
    x = P['word_emb'][input_ids] + P['pos_emb'][:S][None, :, :]
    x = _layer_norm(x, P['emb_ln_g'], P['emb_ln_b'])
    neg = jnp.where(attention_mask[:, None, :] == 0, NEG_INF, 0.0).astype(jnp.float32)
    for l in range(N_LAYERS):
        q = x @ P['wq'][l] + P['bq'][l]
        k = x @ P['wk'][l] + P['bk'][l]
        v = x @ P['wv'][l] + P['bv'][l]
        ctx = []
        for h in range(N_HEADS):
            sl = slice(h * HEAD_DIM, (h + 1) * HEAD_DIM)
            sc = (q[..., sl] / math.sqrt(HEAD_DIM)) @ jnp.swapaxes(k[..., sl], -1, -2) + neg
            m = jnp.max(sc, axis=-1, keepdims=True)
            e = jnp.exp(sc - m)
            p = e / jnp.sum(e, axis=-1, keepdims=True)
            ctx.append(p @ v[..., sl])
        ctx = jnp.concatenate(ctx, axis=-1)
        attn = ctx @ P['wo'][l] + P['bo'][l]
        x = _layer_norm(attn + x, P['ln1_g'][l], P['ln1_b'][l])
        hdn = _gelu(x @ P['w1'][l] + P['b1'][l])
        hdn = hdn @ P['w2'][l] + P['b2'][l]
        x = _layer_norm(hdn + x, P['ln2_g'][l], P['ln2_b'][l])
    cls = x[:, 0, :]
    return jnp.maximum(cls @ P['w_head'] + P['b_head'], 0.0)


# ---- deterministic parameter init ---------------------------------------------
def init_params(key):
    keys = iter(jax.random.split(key, 16))
    nrm = lambda shape: 0.02 * jax.random.normal(next(keys), shape, jnp.float32)
    ones = lambda shape: jnp.ones(shape, jnp.float32)
    zeros = lambda shape: jnp.zeros(shape, jnp.float32)
    return dict(
        word_emb=nrm((VOCAB, HIDDEN)),
        pos_emb=nrm((MAX_POS, HIDDEN)),
        emb_ln_g=ones((1, HIDDEN)), emb_ln_b=zeros((1, HIDDEN)),
        wq=nrm((N_LAYERS, HIDDEN, HIDDEN)), bq=nrm((N_LAYERS, 1, HIDDEN)),
        wk=nrm((N_LAYERS, HIDDEN, HIDDEN)), bk=nrm((N_LAYERS, 1, HIDDEN)),
        wv=nrm((N_LAYERS, HIDDEN, HIDDEN)), bv=nrm((N_LAYERS, 1, HIDDEN)),
        wo=nrm((N_LAYERS, HIDDEN, HIDDEN)), bo=nrm((N_LAYERS, 1, HIDDEN)),
        ln1_g=ones((N_LAYERS, 1, HIDDEN)), ln1_b=zeros((N_LAYERS, 1, HIDDEN)),
        w1=nrm((N_LAYERS, HIDDEN, FFN)), b1=nrm((N_LAYERS, 1, FFN)),
        w2=nrm((N_LAYERS, FFN, HIDDEN)), b2=nrm((N_LAYERS, 1, HIDDEN)),
        ln2_g=ones((N_LAYERS, 1, HIDDEN)), ln2_b=zeros((N_LAYERS, 1, HIDDEN)),
        w_head=nrm((HIDDEN, 3)), b_head=nrm((1, 3)),
    )


if __name__ == "__main__":
    root = jax.random.PRNGKey(0)
    pkey, ikey = jax.random.split(root)
    P = init_params(pkey)
    KP = prepare_kernel_params(P)    # one-time QKV fusion / scale fold / slab packing

    input_ids = jax.random.randint(ikey, (B, S), 0, VOCAB, dtype=jnp.int32)
    attention_mask = jnp.array([[1] * S, [1] * 5 + [0] * 3], dtype=jnp.int32)

    out = auto_transformer_forward(input_ids, attention_mask, KP)
    out = jax.block_until_ready(out)

    ref = reference_forward(input_ids, attention_mask, P)
    assert out.shape == (B, 3), out.shape
    # tolerance accounts for bf16 MXU weight matmuls (f32 accumulation) and the
    # approx EUP reciprocal in the softmax, vs. the all-f32 reference.
    np.testing.assert_allclose(np.asarray(out), np.asarray(ref), atol=5e-3, rtol=5e-3)
    print("KERNEL_OK")
</pallas_src>

<mosaic_0001>
module attributes {stable_mosaic.version = 11 : i64} {
  func.func @encoder_kernel(%arg0: memref<16x32xf32, #tpu.memory_space<vmem>>, %arg1: memref<2x1x8xf32, #tpu.memory_space<vmem>>, %arg2: memref<3x32x192xbf16, #tpu.memory_space<vmem>>, %arg3: memref<2x64x32xbf16, #tpu.memory_space<vmem>>, %arg4: memref<3x8x128xf32, #tpu.memory_space<vmem>>, %arg5: memref<16x128xf32, #tpu.memory_space<vmem>>) attributes {dimension_semantics = [], scalar_prefetch = 0 : i64, scratch_operands = 0 : i64, tpu.core_type = #tpu.core_type<tc>} {
    %c0 = arith.constant 0 : index
    %c0_0 = arith.constant 0 : index
    %0 = vector.load %arg0[%c0, %c0_0] : memref<16x32xf32, #tpu.memory_space<vmem>>, vector<16x32xf32>
    %c0_1 = arith.constant 0 : index
    %c0_2 = arith.constant 0 : index
    %c0_3 = arith.constant 0 : index
    %1 = vector.load %arg1[%c0_1, %c0_2, %c0_3] : memref<2x1x8xf32, #tpu.memory_space<vmem>>, vector<2x1x8xf32>
    %cst = arith.constant 0.000000e+00 : f32
    %2 = vector.broadcast %cst : f32 to vector<2x1x8xf32>
    %3 = arith.cmpf oeq, %1, %2 : vector<2x1x8xf32>
    %cst_4 = arith.constant -1.000000e+09 : f32
    %cst_5 = arith.constant 0.000000e+00 : f32
    %4 = vector.broadcast %cst_4 : f32 to vector<2x1x8xf32>
    %5 = vector.broadcast %cst_5 : f32 to vector<2x1x8xf32>
    %6 = arith.select %3, %4, %5 : vector<2x1x8xi1>, vector<2x1x8xf32>
    %7 = tpu.concatenate %6, %6, %6, %6 in 0 : vector<2x1x8xf32>, vector<2x1x8xf32>, vector<2x1x8xf32>, vector<2x1x8xf32> -> vector<8x1x8xf32>
    %c2 = arith.constant 2 : index
    %c0_6 = arith.constant 0 : index
    %c0_7 = arith.constant 0 : index
    %8 = vector.load %arg4[%c2, %c0_6, %c0_7] : memref<3x8x128xf32, #tpu.memory_space<vmem>>, vector<1x1x32xf32>
    %9 = vector.shape_cast %8 : vector<1x1x32xf32> to vector<1x32xf32>
    %c2_8 = arith.constant 2 : index
    %c1 = arith.constant 1 : index
    %c0_9 = arith.constant 0 : index
    %10 = vector.load %arg4[%c2_8, %c1, %c0_9] : memref<3x8x128xf32, #tpu.memory_space<vmem>>, vector<1x1x32xf32>
    %11 = vector.shape_cast %10 : vector<1x1x32xf32> to vector<1x32xf32>
    %cst_10 = arith.constant dense<0.000000e+00> : vector<16xf32>
    %12 = vector.multi_reduction <add>, %0, %cst_10 [1] : vector<16x32xf32> to vector<16xf32>
    %13 = vector.shape_cast %12 : vector<16xf32> to vector<16x1xf32>
    %cst_11 = arith.constant 3.200000e+01 : f32
    %14 = vector.broadcast %cst_11 : f32 to vector<16x1xf32>
    %15 = arith.divf %13, %14 : vector<16x1xf32>
    %16 = vector.broadcast %15 : vector<16x1xf32> to vector<16x32xf32>
    %17 = arith.subf %0, %16 : vector<16x32xf32>
    %18 = arith.mulf %17, %17 : vector<16x32xf32>
    %cst_12 = arith.constant dense<0.000000e+00> : vector<16xf32>
    %19 = vector.multi_reduction <add>, %18, %cst_12 [1] : vector<16x32xf32> to vector<16xf32>
    %20 = vector.shape_cast %19 : vector<16xf32> to vector<16x1xf32>
    %cst_13 = arith.constant 3.200000e+01 : f32
    %21 = vector.broadcast %cst_13 : f32 to vector<16x1xf32>
    %22 = arith.divf %20, %21 : vector<16x1xf32>
    %23 = vector.broadcast %15 : vector<16x1xf32> to vector<16x32xf32>
    %24 = arith.subf %0, %23 : vector<16x32xf32>
    %cst_14 = arith.constant 9.99999996E-13 : f32
    %25 = vector.broadcast %cst_14 : f32 to vector<16x1xf32>
    %26 = arith.addf %22, %25 : vector<16x1xf32>
    %27 = math.rsqrt %26 : vector<16x1xf32>
    %28 = vector.broadcast %27 : vector<16x1xf32> to vector<16x32xf32>
    %29 = arith.mulf %24, %28 : vector<16x32xf32>
    %30 = vector.broadcast %9 : vector<1x32xf32> to vector<16x32xf32>
    %31 = arith.mulf %29, %30 : vector<16x32xf32>
    %32 = vector.broadcast %11 : vector<1x32xf32> to vector<16x32xf32>
    %33 = arith.addf %31, %32 : vector<16x32xf32>
    %34 = arith.truncf %33 : vector<16x32xf32> to vector<16x32xbf16>
    %c0_15 = arith.constant 0 : index
    %c0_16 = arith.constant 0 : index
    %c0_17 = arith.constant 0 : index
    %35 = vector.load %arg2[%c0_15, %c0_16, %c0_17] : memref<3x32x192xbf16, #tpu.memory_space<vmem>>, vector<1x32x96xbf16>
    %36 = vector.shape_cast %35 : vector<1x32x96xbf16> to vector<32x96xbf16>
    %cst_18 = arith.constant dense<0.000000e+00> : vector<16x96xf32>
    %37 = tpu.matmul %34, %36, %cst_18 {dimension_numbers = #tpu.dot_dimension_numbers<[1], [0], [0], [1], [0, 0, 1, 1], [], []>} : vector<16x32xbf16>, vector<32x96xbf16>, vector<16x96xf32> -> vector<16x96xf32>
    %c0_19 = arith.constant 0 : index
    %c0_20 = arith.constant 0 : index
    %c0_21 = arith.constant 0 : index
    %38 = vector.load %arg4[%c0_19, %c0_20, %c0_21] : memref<3x8x128xf32, #tpu.memory_space<vmem>>, vector<1x1x96xf32>
    %39 = vector.shape_cast %38 : vector<1x1x96xf32> to vector<1x96xf32>
    %40 = vector.broadcast %39 : vector<1x96xf32> to vector<16x96xf32>
    %41 = arith.addf %37, %40 : vector<16x96xf32>
    %42 = vector.extract_strided_slice %41 {offsets = [0, 0], sizes = [16, 8], strides = [1, 1]} : vector<16x96xf32> to vector<16x8xf32>
    %43 = vector.shape_cast %42 : vector<16x8xf32> to vector<2x8x8xf32>
    %44 = vector.extract_strided_slice %41 {offsets = [0, 8], sizes = [16, 8], strides = [1, 1]} : vector<16x96xf32> to vector<16x8xf32>
    %45 = vector.shape_cast %44 : vector<16x8xf32> to vector<2x8x8xf32>
    %46 = vector.extract_strided_slice %41 {offsets = [0, 16], sizes = [16, 8], strides = [1, 1]} : vector<16x96xf32> to vector<16x8xf32>
    %47 = vector.shape_cast %46 : vector<16x8xf32> to vector<2x8x8xf32>
    %48 = vector.extract_strided_slice %41 {offsets = [0, 24], sizes = [16, 8], strides = [1, 1]} : vector<16x96xf32> to vector<16x8xf32>
    %49 = vector.shape_cast %48 : vector<16x8xf32> to vector<2x8x8xf32>
    %50 = tpu.concatenate %43, %45, %47, %49 in 0 : vector<2x8x8xf32>, vector<2x8x8xf32>, vector<2x8x8xf32>, vector<2x8x8xf32> -> vector<8x8x8xf32>
    %51 = vector.extract_strided_slice %41 {offsets = [0, 32], sizes = [16, 8], strides = [1, 1]} : vector<16x96xf32> to vector<16x8xf32>
    %52 = vector.shape_cast %51 : vector<16x8xf32> to vector<2x8x8xf32>
    %53 = vector.extract_strided_slice %41 {offsets = [0, 40], sizes = [16, 8], strides = [1, 1]} : vector<16x96xf32> to vector<16x8xf32>
    %54 = vector.shape_cast %53 : vector<16x8xf32> to vector<2x8x8xf32>
    %55 = vector.extract_strided_slice %41 {offsets = [0, 48], sizes = [16, 8], strides = [1, 1]} : vector<16x96xf32> to vector<16x8xf32>
    %56 = vector.shape_cast %55 : vector<16x8xf32> to vector<2x8x8xf32>
    %57 = vector.extract_strided_slice %41 {offsets = [0, 56], sizes = [16, 8], strides = [1, 1]} : vector<16x96xf32> to vector<16x8xf32>
    %58 = vector.shape_cast %57 : vector<16x8xf32> to vector<2x8x8xf32>
    %59 = tpu.concatenate %52, %54, %56, %58 in 0 : vector<2x8x8xf32>, vector<2x8x8xf32>, vector<2x8x8xf32>, vector<2x8x8xf32> -> vector<8x8x8xf32>
    %60 = vector.extract_strided_slice %41 {offsets = [0, 64], sizes = [16, 8], strides = [1, 1]} : vector<16x96xf32> to vector<16x8xf32>
    %61 = vector.shape_cast %60 : vector<16x8xf32> to vector<2x8x8xf32>
    %62 = vector.extract_strided_slice %41 {offsets = [0, 72], sizes = [16, 8], strides = [1, 1]} : vector<16x96xf32> to vector<16x8xf32>
    %63 = vector.shape_cast %62 : vector<16x8xf32> to vector<2x8x8xf32>
    %64 = vector.extract_strided_slice %41 {offsets = [0, 80], sizes = [16, 8], strides = [1, 1]} : vector<16x96xf32> to vector<16x8xf32>
    %65 = vector.shape_cast %64 : vector<16x8xf32> to vector<2x8x8xf32>
    %66 = vector.extract_strided_slice %41 {offsets = [0, 88], sizes = [16, 8], strides = [1, 1]} : vector<16x96xf32> to vector<16x8xf32>
    %67 = vector.shape_cast %66 : vector<16x8xf32> to vector<2x8x8xf32>
    %68 = tpu.concatenate %61, %63, %65, %67 in 0 : vector<2x8x8xf32>, vector<2x8x8xf32>, vector<2x8x8xf32>, vector<2x8x8xf32> -> vector<8x8x8xf32>
    "tpu.trace_start"() <{level = 10 : i32, message = "bqd,bkd->bqk"}> : () -> ()
    %cst_22 = arith.constant dense<0.000000e+00> : vector<8x8x8xf32>
    %69 = tpu.matmul %50, %59, %cst_22 {dimension_numbers = #tpu.dot_dimension_numbers<[2], [2], [1], [1], [0, 0, 0, 1, 1, 1], [0], [0]>} : vector<8x8x8xf32>, vector<8x8x8xf32>, vector<8x8x8xf32> -> vector<8x8x8xf32>
    "tpu.trace_stop"() : () -> ()
    %70 = vector.broadcast %7 : vector<8x1x8xf32> to vector<8x8x8xf32>
    %71 = arith.addf %69, %70 : vector<8x8x8xf32>
    %cst_23 = arith.constant dense<0xFF800000> : vector<8x8xf32>
    %72 = vector.multi_reduction <maximumf>, %71, %cst_23 [2] : vector<8x8x8xf32> to vector<8x8xf32>
    %73 = vector.shape_cast %72 : vector<8x8xf32> to vector<8x8x1xf32>
    %74 = vector.broadcast %73 : vector<8x8x1xf32> to vector<8x8x8xf32>
    %75 = arith.subf %71, %74 : vector<8x8x8xf32>
    %76 = math.exp %75 : vector<8x8x8xf32>
    %cst_24 = arith.constant dense<0.000000e+00> : vector<8x8xf32>
    %77 = vector.multi_reduction <add>, %76, %cst_24 [2] : vector<8x8x8xf32> to vector<8x8xf32>
    %78 = vector.shape_cast %77 : vector<8x8xf32> to vector<8x8x1xf32>
    %79 = tpu.reciprocal %78 {approx = true} : vector<8x8x1xf32> -> vector<8x8x1xf32>
    %80 = vector.broadcast %79 : vector<8x8x1xf32> to vector<8x8x8xf32>
    %81 = arith.mulf %76, %80 : vector<8x8x8xf32>
    "tpu.trace_start"() <{level = 10 : i32, message = "bqk,bkd->bqd"}> : () -> ()
    %cst_25 = arith.constant dense<0.000000e+00> : vector<8x8x8xf32>
    %82 = tpu.matmul %81, %68, %cst_25 {dimension_numbers = #tpu.dot_dimension_numbers<[2], [1], [1], [2], [0, 0, 0, 1, 1, 2], [0], [0]>} : vector<8x8x8xf32>, vector<8x8x8xf32>, vector<8x8x8xf32> -> vector<8x8x8xf32>
    "tpu.trace_stop"() : () -> ()
    %83 = vector.extract_strided_slice %82 {offsets = [0, 0, 0], sizes = [2, 8, 8], strides = [1, 1, 1]} : vector<8x8x8xf32> to vector<2x8x8xf32>
    %84 = vector.shape_cast %83 : vector<2x8x8xf32> to vector<16x8xf32>
    %85 = vector.extract_strided_slice %82 {offsets = [2, 0, 0], sizes = [2, 8, 8], strides = [1, 1, 1]} : vector<8x8x8xf32> to vector<2x8x8xf32>
    %86 = vector.shape_cast %85 : vector<2x8x8xf32> to vector<16x8xf32>
    %87 = vector.extract_strided_slice %82 {offsets = [4, 0, 0], sizes = [2, 8, 8], strides = [1, 1, 1]} : vector<8x8x8xf32> to vector<2x8x8xf32>
    %88 = vector.shape_cast %87 : vector<2x8x8xf32> to vector<16x8xf32>
    %89 = vector.extract_strided_slice %82 {offsets = [6, 0, 0], sizes = [2, 8, 8], strides = [1, 1, 1]} : vector<8x8x8xf32> to vector<2x8x8xf32>
    %90 = vector.shape_cast %89 : vector<2x8x8xf32> to vector<16x8xf32>
    %91 = tpu.concatenate %84, %86, %88, %90 in 1 : vector<16x8xf32>, vector<16x8xf32>, vector<16x8xf32>, vector<16x8xf32> -> vector<16x32xf32>
    %92 = arith.truncf %91 : vector<16x32xf32> to vector<16x32xbf16>
    %c0_26 = arith.constant 0 : index
    %c0_27 = arith.constant 0 : index
    %c96 = arith.constant 96 : index
    %93 = vector.load %arg2[%c0_26, %c0_27, %c96] : memref<3x32x192xbf16, #tpu.memory_space<vmem>>, vector<1x32x32xbf16>
    %94 = vector.shape_cast %93 : vector<1x32x32xbf16> to vector<32x32xbf16>
    %cst_28 = arith.constant dense<0.000000e+00> : vector<16x32xf32>
    %95 = tpu.matmul %92, %94, %cst_28 {dimension_numbers = #tpu.dot_dimension_numbers<[1], [0], [0], [1], [0, 0, 1, 1], [], []>} : vector<16x32xbf16>, vector<32x32xbf16>, vector<16x32xf32> -> vector<16x32xf32>
    %c0_29 = arith.constant 0 : index
    %c1_30 = arith.constant 1 : index
    %c0_31 = arith.constant 0 : index
    %96 = vector.load %arg4[%c0_29, %c1_30, %c0_31] : memref<3x8x128xf32, #tpu.memory_space<vmem>>, vector<1x1x32xf32>
    %97 = vector.shape_cast %96 : vector<1x1x32xf32> to vector<1x32xf32>
    %98 = vector.broadcast %97 : vector<1x32xf32> to vector<16x32xf32>
    %99 = arith.addf %95, %98 : vector<16x32xf32>
    %100 = arith.addf %99, %33 : vector<16x32xf32>
    %c0_32 = arith.constant 0 : index
    %c4 = arith.constant 4 : index
    %c0_33 = arith.constant 0 : index
    %101 = vector.load %arg4[%c0_32, %c4, %c0_33] : memref<3x8x128xf32, #tpu.memory_space<vmem>>, vector<1x1x32xf32>
    %102 = vector.shape_cast %101 : vector<1x1x32xf32> to vector<1x32xf32>
    %c0_34 = arith.constant 0 : index
    %c5 = arith.constant 5 : index
    %c0_35 = arith.constant 0 : index
    %103 = vector.load %arg4[%c0_34, %c5, %c0_35] : memref<3x8x128xf32, #tpu.memory_space<vmem>>, vector<1x1x32xf32>
    %104 = vector.shape_cast %103 : vector<1x1x32xf32> to vector<1x32xf32>
    %cst_36 = arith.constant dense<0.000000e+00> : vector<16xf32>
    %105 = vector.multi_reduction <add>, %100, %cst_36 [1] : vector<16x32xf32> to vector<16xf32>
    %106 = vector.shape_cast %105 : vector<16xf32> to vector<16x1xf32>
    %cst_37 = arith.constant 3.200000e+01 : f32
    %107 = vector.broadcast %cst_37 : f32 to vector<16x1xf32>
    %108 = arith.divf %106, %107 : vector<16x1xf32>
    %109 = vector.broadcast %108 : vector<16x1xf32> to vector<16x32xf32>
    %110 = arith.subf %100, %109 : vector<16x32xf32>
    %111 = arith.mulf %110, %110 : vector<16x32xf32>
    %cst_38 = arith.constant dense<0.000000e+00> : vector<16xf32>
    %112 = vector.multi_reduction <add>, %111, %cst_38 [1] : vector<16x32xf32> to vector<16xf32>
    %113 = vector.shape_cast %112 : vector<16xf32> to vector<16x1xf32>
    %cst_39 = arith.constant 3.200000e+01 : f32
    %114 = vector.broadcast %cst_39 : f32 to vector<16x1xf32>
    %115 = arith.divf %113, %114 : vector<16x1xf32>
    %116 = vector.broadcast %108 : vector<16x1xf32> to vector<16x32xf32>
    %117 = arith.subf %100, %116 : vector<16x32xf32>
    %cst_40 = arith.constant 9.99999996E-13 : f32
    %118 = vector.broadcast %cst_40 : f32 to vector<16x1xf32>
    %119 = arith.addf %115, %118 : vector<16x1xf32>
    %120 = math.rsqrt %119 : vector<16x1xf32>
    %121 = vector.broadcast %120 : vector<16x1xf32> to vector<16x32xf32>
    %122 = arith.mulf %117, %121 : vector<16x32xf32>
    %123 = vector.broadcast %102 : vector<1x32xf32> to vector<16x32xf32>
    %124 = arith.mulf %122, %123 : vector<16x32xf32>
    %125 = vector.broadcast %104 : vector<1x32xf32> to vector<16x32xf32>
    %126 = arith.addf %124, %125 : vector<16x32xf32>
    %127 = arith.truncf %126 : vector<16x32xf32> to vector<16x32xbf16>
    %c0_41 = arith.constant 0 : index
    %c0_42 = arith.constant 0 : index
    %c128 = arith.constant 128 : index
    %128 = vector.load %arg2[%c0_41, %c0_42, %c128] : memref<3x32x192xbf16, #tpu.memory_space<vmem>>, vector<1x32x64xbf16>
    %129 = vector.shape_cast %128 : vector<1x32x64xbf16> to vector<32x64xbf16>
    %cst_43 = arith.constant dense<0.000000e+00> : vector<16x64xf32>
    %130 = tpu.matmul %127, %129, %cst_43 {dimension_numbers = #tpu.dot_dimension_numbers<[1], [0], [0], [1], [0, 0, 1, 1], [], []>} : vector<16x32xbf16>, vector<32x64xbf16>, vector<16x64xf32> -> vector<16x64xf32>
    %c0_44 = arith.constant 0 : index
    %c2_45 = arith.constant 2 : index
    %c0_46 = arith.constant 0 : index
    %131 = vector.load %arg4[%c0_44, %c2_45, %c0_46] : memref<3x8x128xf32, #tpu.memory_space<vmem>>, vector<1x1x64xf32>
    %132 = vector.shape_cast %131 : vector<1x1x64xf32> to vector<1x64xf32>
    %133 = vector.broadcast %132 : vector<1x64xf32> to vector<16x64xf32>
    %134 = arith.addf %130, %133 : vector<16x64xf32>
    %cst_47 = arith.constant 5.000000e-01 : f32
    %135 = vector.broadcast %cst_47 : f32 to vector<16x64xf32>
    %136 = arith.mulf %135, %134 : vector<16x64xf32>
    %cst_48 = arith.constant 4.471500e-02 : f32
    %137 = vector.broadcast %cst_48 : f32 to vector<16x64xf32>
    %138 = arith.mulf %137, %134 : vector<16x64xf32>
    %139 = arith.mulf %138, %134 : vector<16x64xf32>
    %140 = arith.mulf %139, %134 : vector<16x64xf32>
    %141 = arith.addf %134, %140 : vector<16x64xf32>
    %cst_49 = arith.constant 0.797884583 : f32
    %142 = vector.broadcast %cst_49 : f32 to vector<16x64xf32>
    %143 = arith.mulf %142, %141 : vector<16x64xf32>
    %144 = math.tanh %143 : vector<16x64xf32>
    %cst_50 = arith.constant 1.000000e+00 : f32
    %145 = vector.broadcast %cst_50 : f32 to vector<16x64xf32>
    %146 = arith.addf %145, %144 : vector<16x64xf32>
    %147 = arith.mulf %136, %146 : vector<16x64xf32>
    %148 = arith.truncf %147 : vector<16x64xf32> to vector<16x64xbf16>
    %c0_51 = arith.constant 0 : index
    %c0_52 = arith.constant 0 : index
    %c0_53 = arith.constant 0 : index
    %149 = vector.load %arg3[%c0_51, %c0_52, %c0_53] : memref<2x64x32xbf16, #tpu.memory_space<vmem>>, vector<1x64x32xbf16>
    %150 = vector.shape_cast %149 : vector<1x64x32xbf16> to vector<64x32xbf16>
    %cst_54 = arith.constant dense<0.000000e+00> : vector<16x32xf32>
    %151 = tpu.matmul %148, %150, %cst_54 {dimension_numbers = #tpu.dot_dimension_numbers<[1], [0], [0], [1], [0, 0, 1, 1], [], []>} : vector<16x64xbf16>, vector<64x32xbf16>, vector<16x32xf32> -> vector<16x32xf32>
    %c0_55 = arith.constant 0 : index
    %c3 = arith.constant 3 : index
    %c0_56 = arith.constant 0 : index
    %152 = vector.load %arg4[%c0_55, %c3, %c0_56] : memref<3x8x128xf32, #tpu.memory_space<vmem>>, vector<1x1x32xf32>
    %153 = vector.shape_cast %152 : vector<1x1x32xf32> to vector<1x32xf32>
    %154 = vector.broadcast %153 : vector<1x32xf32> to vector<16x32xf32>
    %155 = arith.addf %151, %154 : vector<16x32xf32>
    %156 = arith.addf %155, %126 : vector<16x32xf32>
    %c0_57 = arith.constant 0 : index
    %c6 = arith.constant 6 : index
    %c0_58 = arith.constant 0 : index
    %157 = vector.load %arg4[%c0_57, %c6, %c0_58] : memref<3x8x128xf32, #tpu.memory_space<vmem>>, vector<1x1x32xf32>
    %158 = vector.shape_cast %157 : vector<1x1x32xf32> to vector<1x32xf32>
    %c0_59 = arith.constant 0 : index
    %c7 = arith.constant 7 : index
    %c0_60 = arith.constant 0 : index
    %159 = vector.load %arg4[%c0_59, %c7, %c0_60] : memref<3x8x128xf32, #tpu.memory_space<vmem>>, vector<1x1x32xf32>
    %160 = vector.shape_cast %159 : vector<1x1x32xf32> to vector<1x32xf32>
    %cst_61 = arith.constant dense<0.000000e+00> : vector<16xf32>
    %161 = vector.multi_reduction <add>, %156, %cst_61 [1] : vector<16x32xf32> to vector<16xf32>
    %162 = vector.shape_cast %161 : vector<16xf32> to vector<16x1xf32>
    %cst_62 = arith.constant 3.200000e+01 : f32
    %163 = vector.broadcast %cst_62 : f32 to vector<16x1xf32>
    %164 = arith.divf %162, %163 : vector<16x1xf32>
    %165 = vector.broadcast %164 : vector<16x1xf32> to vector<16x32xf32>
    %166 = arith.subf %156, %165 : vector<16x32xf32>
    %167 = arith.mulf %166, %166 : vector<16x32xf32>
    %cst_63 = arith.constant dense<0.000000e+00> : vector<16xf32>
    %168 = vector.multi_reduction <add>, %167, %cst_63 [1] : vector<16x32xf32> to vector<16xf32>
    %169 = vector.shape_cast %168 : vector<16xf32> to vector<16x1xf32>
    %cst_64 = arith.constant 3.200000e+01 : f32
    %170 = vector.broadcast %cst_64 : f32 to vector<16x1xf32>
    %171 = arith.divf %169, %170 : vector<16x1xf32>
    %172 = vector.broadcast %164 : vector<16x1xf32> to vector<16x32xf32>
    %173 = arith.subf %156, %172 : vector<16x32xf32>
    %cst_65 = arith.constant 9.99999996E-13 : f32
    %174 = vector.broadcast %cst_65 : f32 to vector<16x1xf32>
    %175 = arith.addf %171, %174 : vector<16x1xf32>
    %176 = math.rsqrt %175 : vector<16x1xf32>
    %177 = vector.broadcast %176 : vector<16x1xf32> to vector<16x32xf32>
    %178 = arith.mulf %173, %177 : vector<16x32xf32>
    %179 = vector.broadcast %158 : vector<1x32xf32> to vector<16x32xf32>
    %180 = arith.mulf %178, %179 : vector<16x32xf32>
    %181 = vector.broadcast %160 : vector<1x32xf32> to vector<16x32xf32>
    %182 = arith.addf %180, %181 : vector<16x32xf32>
    %183 = arith.truncf %182 : vector<16x32xf32> to vector<16x32xbf16>
    %c1_66 = arith.constant 1 : index
    %c0_67 = arith.constant 0 : index
    %c0_68 = arith.constant 0 : index
    %184 = vector.load %arg2[%c1_66, %c0_67, %c0_68] : memref<3x32x192xbf16, #tpu.memory_space<vmem>>, vector<1x32x96xbf16>
    %185 = vector.shape_cast %184 : vector<1x32x96xbf16> to vector<32x96xbf16>
    %cst_69 = arith.constant dense<0.000000e+00> : vector<16x96xf32>
    %186 = tpu.matmul %183, %185, %cst_69 {dimension_numbers = #tpu.dot_dimension_numbers<[1], [0], [0], [1], [0, 0, 1, 1], [], []>} : vector<16x32xbf16>, vector<32x96xbf16>, vector<16x96xf32> -> vector<16x96xf32>
    %c1_70 = arith.constant 1 : index
    %c0_71 = arith.constant 0 : index
    %c0_72 = arith.constant 0 : index
    %187 = vector.load %arg4[%c1_70, %c0_71, %c0_72] : memref<3x8x128xf32, #tpu.memory_space<vmem>>, vector<1x1x96xf32>
    %188 = vector.shape_cast %187 : vector<1x1x96xf32> to vector<1x96xf32>
    %189 = vector.broadcast %188 : vector<1x96xf32> to vector<16x96xf32>
    %190 = arith.addf %186, %189 : vector<16x96xf32>
    %191 = vector.extract_strided_slice %190 {offsets = [0, 0], sizes = [16, 8], strides = [1, 1]} : vector<16x96xf32> to vector<16x8xf32>
    %192 = vector.shape_cast %191 : vector<16x8xf32> to vector<2x8x8xf32>
    %193 = vector.extract_strided_slice %190 {offsets = [0, 8], sizes = [16, 8], strides = [1, 1]} : vector<16x96xf32> to vector<16x8xf32>
    %194 = vector.shape_cast %193 : vector<16x8xf32> to vector<2x8x8xf32>
    %195 = vector.extract_strided_slice %190 {offsets = [0, 16], sizes = [16, 8], strides = [1, 1]} : vector<16x96xf32> to vector<16x8xf32>
    %196 = vector.shape_cast %195 : vector<16x8xf32> to vector<2x8x8xf32>
    %197 = vector.extract_strided_slice %190 {offsets = [0, 24], sizes = [16, 8], strides = [1, 1]} : vector<16x96xf32> to vector<16x8xf32>
    %198 = vector.shape_cast %197 : vector<16x8xf32> to vector<2x8x8xf32>
    %199 = tpu.concatenate %192, %194, %196, %198 in 0 : vector<2x8x8xf32>, vector<2x8x8xf32>, vector<2x8x8xf32>, vector<2x8x8xf32> -> vector<8x8x8xf32>
    %200 = vector.extract_strided_slice %190 {offsets = [0, 32], sizes = [16, 8], strides = [1, 1]} : vector<16x96xf32> to vector<16x8xf32>
    %201 = vector.shape_cast %200 : vector<16x8xf32> to vector<2x8x8xf32>
    %202 = vector.extract_strided_slice %190 {offsets = [0, 40], sizes = [16, 8], strides = [1, 1]} : vector<16x96xf32> to vector<16x8xf32>
    %203 = vector.shape_cast %202 : vector<16x8xf32> to vector<2x8x8xf32>
    %204 = vector.extract_strided_slice %190 {offsets = [0, 48], sizes = [16, 8], strides = [1, 1]} : vector<16x96xf32> to vector<16x8xf32>
    %205 = vector.shape_cast %204 : vector<16x8xf32> to vector<2x8x8xf32>
    %206 = vector.extract_strided_slice %190 {offsets = [0, 56], sizes = [16, 8], strides = [1, 1]} : vector<16x96xf32> to vector<16x8xf32>
    %207 = vector.shape_cast %206 : vector<16x8xf32> to vector<2x8x8xf32>
    %208 = tpu.concatenate %201, %203, %205, %207 in 0 : vector<2x8x8xf32>, vector<2x8x8xf32>, vector<2x8x8xf32>, vector<2x8x8xf32> -> vector<8x8x8xf32>
    %209 = vector.extract_strided_slice %190 {offsets = [0, 64], sizes = [16, 8], strides = [1, 1]} : vector<16x96xf32> to vector<16x8xf32>
    %210 = vector.shape_cast %209 : vector<16x8xf32> to vector<2x8x8xf32>
    %211 = vector.extract_strided_slice %190 {offsets = [0, 72], sizes = [16, 8], strides = [1, 1]} : vector<16x96xf32> to vector<16x8xf32>
    %212 = vector.shape_cast %211 : vector<16x8xf32> to vector<2x8x8xf32>
    %213 = vector.extract_strided_slice %190 {offsets = [0, 80], sizes = [16, 8], strides = [1, 1]} : vector<16x96xf32> to vector<16x8xf32>
    %214 = vector.shape_cast %213 : vector<16x8xf32> to vector<2x8x8xf32>
    %215 = vector.extract_strided_slice %190 {offsets = [0, 88], sizes = [16, 8], strides = [1, 1]} : vector<16x96xf32> to vector<16x8xf32>
    %216 = vector.shape_cast %215 : vector<16x8xf32> to vector<2x8x8xf32>
    %217 = tpu.concatenate %210, %212, %214, %216 in 0 : vector<2x8x8xf32>, vector<2x8x8xf32>, vector<2x8x8xf32>, vector<2x8x8xf32> -> vector<8x8x8xf32>
    "tpu.trace_start"() <{level = 10 : i32, message = "bqd,bkd->bqk"}> : () -> ()
    %cst_73 = arith.constant dense<0.000000e+00> : vector<8x8x8xf32>
    %218 = tpu.matmul %199, %208, %cst_73 {dimension_numbers = #tpu.dot_dimension_numbers<[2], [2], [1], [1], [0, 0, 0, 1, 1, 1], [0], [0]>} : vector<8x8x8xf32>, vector<8x8x8xf32>, vector<8x8x8xf32> -> vector<8x8x8xf32>
    "tpu.trace_stop"() : () -> ()
    %219 = vector.broadcast %7 : vector<8x1x8xf32> to vector<8x8x8xf32>
    %220 = arith.addf %218, %219 : vector<8x8x8xf32>
    %cst_74 = arith.constant dense<0xFF800000> : vector<8x8xf32>
    %221 = vector.multi_reduction <maximumf>, %220, %cst_74 [2] : vector<8x8x8xf32> to vector<8x8xf32>
    %222 = vector.shape_cast %221 : vector<8x8xf32> to vector<8x8x1xf32>
    %223 = vector.broadcast %222 : vector<8x8x1xf32> to vector<8x8x8xf32>
    %224 = arith.subf %220, %223 : vector<8x8x8xf32>
    %225 = math.exp %224 : vector<8x8x8xf32>
    %cst_75 = arith.constant dense<0.000000e+00> : vector<8x8xf32>
    %226 = vector.multi_reduction <add>, %225, %cst_75 [2] : vector<8x8x8xf32> to vector<8x8xf32>
    %227 = vector.shape_cast %226 : vector<8x8xf32> to vector<8x8x1xf32>
    %228 = tpu.reciprocal %227 {approx = true} : vector<8x8x1xf32> -> vector<8x8x1xf32>
    %229 = vector.broadcast %228 : vector<8x8x1xf32> to vector<8x8x8xf32>
    %230 = arith.mulf %225, %229 : vector<8x8x8xf32>
    "tpu.trace_start"() <{level = 10 : i32, message = "bqk,bkd->bqd"}> : () -> ()
    %cst_76 = arith.constant dense<0.000000e+00> : vector<8x8x8xf32>
    %231 = tpu.matmul %230, %217, %cst_76 {dimension_numbers = #tpu.dot_dimension_numbers<[2], [1], [1], [2], [0, 0, 0, 1, 1, 2], [0], [0]>} : vector<8x8x8xf32>, vector<8x8x8xf32>, vector<8x8x8xf32> -> vector<8x8x8xf32>
    "tpu.trace_stop"() : () -> ()
    %232 = vector.extract_strided_slice %231 {offsets = [0, 0, 0], sizes = [2, 8, 8], strides = [1, 1, 1]} : vector<8x8x8xf32> to vector<2x8x8xf32>
    %233 = vector.shape_cast %232 : vector<2x8x8xf32> to vector<16x8xf32>
    %234 = vector.extract_strided_slice %231 {offsets = [2, 0, 0], sizes = [2, 8, 8], strides = [1, 1, 1]} : vector<8x8x8xf32> to vector<2x8x8xf32>
    %235 = vector.shape_cast %234 : vector<2x8x8xf32> to vector<16x8xf32>
    %236 = vector.extract_strided_slice %231 {offsets = [4, 0, 0], sizes = [2, 8, 8], strides = [1, 1, 1]} : vector<8x8x8xf32> to vector<2x8x8xf32>
    %237 = vector.shape_cast %236 : vector<2x8x8xf32> to vector<16x8xf32>
    %238 = vector.extract_strided_slice %231 {offsets = [6, 0, 0], sizes = [2, 8, 8], strides = [1, 1, 1]} : vector<8x8x8xf32> to vector<2x8x8xf32>
    %239 = vector.shape_cast %238 : vector<2x8x8xf32> to vector<16x8xf32>
    %240 = tpu.concatenate %233, %235, %237, %239 in 1 : vector<16x8xf32>, vector<16x8xf32>, vector<16x8xf32>, vector<16x8xf32> -> vector<16x32xf32>
    %241 = arith.truncf %240 : vector<16x32xf32> to vector<16x32xbf16>
    %c1_77 = arith.constant 1 : index
    %c0_78 = arith.constant 0 : index
    %c96_79 = arith.constant 96 : index
    %242 = vector.load %arg2[%c1_77, %c0_78, %c96_79] : memref<3x32x192xbf16, #tpu.memory_space<vmem>>, vector<1x32x32xbf16>
    %243 = vector.shape_cast %242 : vector<1x32x32xbf16> to vector<32x32xbf16>
    %cst_80 = arith.constant dense<0.000000e+00> : vector<16x32xf32>
    %244 = tpu.matmul %241, %243, %cst_80 {dimension_numbers = #tpu.dot_dimension_numbers<[1], [0], [0], [1], [0, 0, 1, 1], [], []>} : vector<16x32xbf16>, vector<32x32xbf16>, vector<16x32xf32> -> vector<16x32xf32>
    %c1_81 = arith.constant 1 : index
    %c1_82 = arith.constant 1 : index
    %c0_83 = arith.constant 0 : index
    %245 = vector.load %arg4[%c1_81, %c1_82, %c0_83] : memref<3x8x128xf32, #tpu.memory_space<vmem>>, vector<1x1x32xf32>
    %246 = vector.shape_cast %245 : vector<1x1x32xf32> to vector<1x32xf32>
    %247 = vector.broadcast %246 : vector<1x32xf32> to vector<16x32xf32>
    %248 = arith.addf %244, %247 : vector<16x32xf32>
    %249 = arith.addf %248, %182 : vector<16x32xf32>
    %c1_84 = arith.constant 1 : index
    %c4_85 = arith.constant 4 : index
    %c0_86 = arith.constant 0 : index
    %250 = vector.load %arg4[%c1_84, %c4_85, %c0_86] : memref<3x8x128xf32, #tpu.memory_space<vmem>>, vector<1x1x32xf32>
    %251 = vector.shape_cast %250 : vector<1x1x32xf32> to vector<1x32xf32>
    %c1_87 = arith.constant 1 : index
    %c5_88 = arith.constant 5 : index
    %c0_89 = arith.constant 0 : index
    %252 = vector.load %arg4[%c1_87, %c5_88, %c0_89] : memref<3x8x128xf32, #tpu.memory_space<vmem>>, vector<1x1x32xf32>
    %253 = vector.shape_cast %252 : vector<1x1x32xf32> to vector<1x32xf32>
    %cst_90 = arith.constant dense<0.000000e+00> : vector<16xf32>
    %254 = vector.multi_reduction <add>, %249, %cst_90 [1] : vector<16x32xf32> to vector<16xf32>
    %255 = vector.shape_cast %254 : vector<16xf32> to vector<16x1xf32>
    %cst_91 = arith.constant 3.200000e+01 : f32
    %256 = vector.broadcast %cst_91 : f32 to vector<16x1xf32>
    %257 = arith.divf %255, %256 : vector<16x1xf32>
    %258 = vector.broadcast %257 : vector<16x1xf32> to vector<16x32xf32>
    %259 = arith.subf %249, %258 : vector<16x32xf32>
    %260 = arith.mulf %259, %259 : vector<16x32xf32>
    %cst_92 = arith.constant dense<0.000000e+00> : vector<16xf32>
    %261 = vector.multi_reduction <add>, %260, %cst_92 [1] : vector<16x32xf32> to vector<16xf32>
    %262 = vector.shape_cast %261 : vector<16xf32> to vector<16x1xf32>
    %cst_93 = arith.constant 3.200000e+01 : f32
    %263 = vector.broadcast %cst_93 : f32 to vector<16x1xf32>
    %264 = arith.divf %262, %263 : vector<16x1xf32>
    %265 = vector.broadcast %257 : vector<16x1xf32> to vector<16x32xf32>
    %266 = arith.subf %249, %265 : vector<16x32xf32>
    %cst_94 = arith.constant 9.99999996E-13 : f32
    %267 = vector.broadcast %cst_94 : f32 to vector<16x1xf32>
    %268 = arith.addf %264, %267 : vector<16x1xf32>
    %269 = math.rsqrt %268 : vector<16x1xf32>
    %270 = vector.broadcast %269 : vector<16x1xf32> to vector<16x32xf32>
    %271 = arith.mulf %266, %270 : vector<16x32xf32>
    %272 = vector.broadcast %251 : vector<1x32xf32> to vector<16x32xf32>
    %273 = arith.mulf %271, %272 : vector<16x32xf32>
    %274 = vector.broadcast %253 : vector<1x32xf32> to vector<16x32xf32>
    %275 = arith.addf %273, %274 : vector<16x32xf32>
    %276 = arith.truncf %275 : vector<16x32xf32> to vector<16x32xbf16>
    %c1_95 = arith.constant 1 : index
    %c0_96 = arith.constant 0 : index
    %c128_97 = arith.constant 128 : index
    %277 = vector.load %arg2[%c1_95, %c0_96, %c128_97] : memref<3x32x192xbf16, #tpu.memory_space<vmem>>, vector<1x32x64xbf16>
    %278 = vector.shape_cast %277 : vector<1x32x64xbf16> to vector<32x64xbf16>
    %cst_98 = arith.constant dense<0.000000e+00> : vector<16x64xf32>
    %279 = tpu.matmul %276, %278, %cst_98 {dimension_numbers = #tpu.dot_dimension_numbers<[1], [0], [0], [1], [0, 0, 1, 1], [], []>} : vector<16x32xbf16>, vector<32x64xbf16>, vector<16x64xf32> -> vector<16x64xf32>
    %c1_99 = arith.constant 1 : index
    %c2_100 = arith.constant 2 : index
    %c0_101 = arith.constant 0 : index
    %280 = vector.load %arg4[%c1_99, %c2_100, %c0_101] : memref<3x8x128xf32, #tpu.memory_space<vmem>>, vector<1x1x64xf32>
    %281 = vector.shape_cast %280 : vector<1x1x64xf32> to vector<1x64xf32>
    %282 = vector.broadcast %281 : vector<1x64xf32> to vector<16x64xf32>
    %283 = arith.addf %279, %282 : vector<16x64xf32>
    %cst_102 = arith.constant 5.000000e-01 : f32
    %284 = vector.broadcast %cst_102 : f32 to vector<16x64xf32>
    %285 = arith.mulf %284, %283 : vector<16x64xf32>
    %cst_103 = arith.constant 4.471500e-02 : f32
    %286 = vector.broadcast %cst_103 : f32 to vector<16x64xf32>
    %287 = arith.mulf %286, %283 : vector<16x64xf32>
    %288 = arith.mulf %287, %283 : vector<16x64xf32>
    %289 = arith.mulf %288, %283 : vector<16x64xf32>
    %290 = arith.addf %283, %289 : vector<16x64xf32>
    %cst_104 = arith.constant 0.797884583 : f32
    %291 = vector.broadcast %cst_104 : f32 to vector<16x64xf32>
    %292 = arith.mulf %291, %290 : vector<16x64xf32>
    %293 = math.tanh %292 : vector<16x64xf32>
    %cst_105 = arith.constant 1.000000e+00 : f32
    %294 = vector.broadcast %cst_105 : f32 to vector<16x64xf32>
    %295 = arith.addf %294, %293 : vector<16x64xf32>
    %296 = arith.mulf %285, %295 : vector<16x64xf32>
    %297 = arith.truncf %296 : vector<16x64xf32> to vector<16x64xbf16>
    %c1_106 = arith.constant 1 : index
    %c0_107 = arith.constant 0 : index
    %c0_108 = arith.constant 0 : index
    %298 = vector.load %arg3[%c1_106, %c0_107, %c0_108] : memref<2x64x32xbf16, #tpu.memory_space<vmem>>, vector<1x64x32xbf16>
    %299 = vector.shape_cast %298 : vector<1x64x32xbf16> to vector<64x32xbf16>
    %cst_109 = arith.constant dense<0.000000e+00> : vector<16x32xf32>
    %300 = tpu.matmul %297, %299, %cst_109 {dimension_numbers = #tpu.dot_dimension_numbers<[1], [0], [0], [1], [0, 0, 1, 1], [], []>} : vector<16x64xbf16>, vector<64x32xbf16>, vector<16x32xf32> -> vector<16x32xf32>
    %c1_110 = arith.constant 1 : index
    %c3_111 = arith.constant 3 : index
    %c0_112 = arith.constant 0 : index
    %301 = vector.load %arg4[%c1_110, %c3_111, %c0_112] : memref<3x8x128xf32, #tpu.memory_space<vmem>>, vector<1x1x32xf32>
    %302 = vector.shape_cast %301 : vector<1x1x32xf32> to vector<1x32xf32>
    %303 = vector.broadcast %302 : vector<1x32xf32> to vector<16x32xf32>
    %304 = arith.addf %300, %303 : vector<16x32xf32>
    %305 = arith.addf %304, %275 : vector<16x32xf32>
    %c1_113 = arith.constant 1 : index
    %c6_114 = arith.constant 6 : index
    %c0_115 = arith.constant 0 : index
    %306 = vector.load %arg4[%c1_113, %c6_114, %c0_115] : memref<3x8x128xf32, #tpu.memory_space<vmem>>, vector<1x1x32xf32>
    %307 = vector.shape_cast %306 : vector<1x1x32xf32> to vector<1x32xf32>
    %c1_116 = arith.constant 1 : index
    %c7_117 = arith.constant 7 : index
    %c0_118 = arith.constant 0 : index
    %308 = vector.load %arg4[%c1_116, %c7_117, %c0_118] : memref<3x8x128xf32, #tpu.memory_space<vmem>>, vector<1x1x32xf32>
    %309 = vector.shape_cast %308 : vector<1x1x32xf32> to vector<1x32xf32>
    %cst_119 = arith.constant dense<0.000000e+00> : vector<16xf32>
    %310 = vector.multi_reduction <add>, %305, %cst_119 [1] : vector<16x32xf32> to vector<16xf32>
    %311 = vector.shape_cast %310 : vector<16xf32> to vector<16x1xf32>
    %cst_120 = arith.constant 3.200000e+01 : f32
    %312 = vector.broadcast %cst_120 : f32 to vector<16x1xf32>
    %313 = arith.divf %311, %312 : vector<16x1xf32>
    %314 = vector.broadcast %313 : vector<16x1xf32> to vector<16x32xf32>
    %315 = arith.subf %305, %314 : vector<16x32xf32>
    %316 = arith.mulf %315, %315 : vector<16x32xf32>
    %cst_121 = arith.constant dense<0.000000e+00> : vector<16xf32>
    %317 = vector.multi_reduction <add>, %316, %cst_121 [1] : vector<16x32xf32> to vector<16xf32>
    %318 = vector.shape_cast %317 : vector<16xf32> to vector<16x1xf32>
    %cst_122 = arith.constant 3.200000e+01 : f32
    %319 = vector.broadcast %cst_122 : f32 to vector<16x1xf32>
    %320 = arith.divf %318, %319 : vector<16x1xf32>
    %321 = vector.broadcast %313 : vector<16x1xf32> to vector<16x32xf32>
    %322 = arith.subf %305, %321 : vector<16x32xf32>
    %cst_123 = arith.constant 9.99999996E-13 : f32
    %323 = vector.broadcast %cst_123 : f32 to vector<16x1xf32>
    %324 = arith.addf %320, %323 : vector<16x1xf32>
    %325 = math.rsqrt %324 : vector<16x1xf32>
    %326 = vector.broadcast %325 : vector<16x1xf32> to vector<16x32xf32>
    %327 = arith.mulf %322, %326 : vector<16x32xf32>
    %328 = vector.broadcast %307 : vector<1x32xf32> to vector<16x32xf32>
    %329 = arith.mulf %327, %328 : vector<16x32xf32>
    %330 = vector.broadcast %309 : vector<1x32xf32> to vector<16x32xf32>
    %331 = arith.addf %329, %330 : vector<16x32xf32>
    %332 = arith.truncf %331 : vector<16x32xf32> to vector<16x32xbf16>
    %c2_124 = arith.constant 2 : index
    %c0_125 = arith.constant 0 : index
    %c0_126 = arith.constant 0 : index
    %333 = vector.load %arg2[%c2_124, %c0_125, %c0_126] : memref<3x32x192xbf16, #tpu.memory_space<vmem>>, vector<1x32x128xbf16>
    %334 = vector.shape_cast %333 : vector<1x32x128xbf16> to vector<32x128xbf16>
    %cst_127 = arith.constant dense<0.000000e+00> : vector<16x128xf32>
    %335 = tpu.matmul %332, %334, %cst_127 {dimension_numbers = #tpu.dot_dimension_numbers<[1], [0], [0], [1], [0, 0, 1, 1], [], []>} : vector<16x32xbf16>, vector<32x128xbf16>, vector<16x128xf32> -> vector<16x128xf32>
    %c2_128 = arith.constant 2 : index
    %c2_129 = arith.constant 2 : index
    %c0_130 = arith.constant 0 : index
    %336 = vector.load %arg4[%c2_128, %c2_129, %c0_130] : memref<3x8x128xf32, #tpu.memory_space<vmem>>, vector<1x1x128xf32>
    %337 = vector.shape_cast %336 : vector<1x1x128xf32> to vector<1x128xf32>
    %338 = vector.broadcast %337 : vector<1x128xf32> to vector<16x128xf32>
    %339 = arith.addf %335, %338 : vector<16x128xf32>
    %cst_131 = arith.constant 0.000000e+00 : f32
    %340 = vector.broadcast %cst_131 : f32 to vector<16x128xf32>
    %341 = arith.maximumf %339, %340 : vector<16x128xf32>
    %c0_132 = arith.constant 0 : index
    %c0_133 = arith.constant 0 : index
    %342 = vector.load %arg5[%c0_132, %c0_133] : memref<16x128xf32, #tpu.memory_space<vmem>>, vector<16x128xf32>
    tpu.vector_store %arg5[%c0_132, %c0_133], %341 {strides = array<i32>} : memref<16x128xf32, #tpu.memory_space<vmem>>, vector<16x128xf32>,
    return
  }
}

</mosaic_0001>

<bundles_post_ra>
// kernel: tpu_custom_call.1
= control target key start
LH: loop header
LB: loop body
LE: loop exit
PB: predicated region body
PF: predicated region fallthrough
CT: control target
= control target key end

     0   :  { %10 = vsyncpa [#allocation3], 0  ;;  %s5000_s0 = inlined_call_operand.hbm [shape: f32[16,32], index: 0, kind: input, shape index: {}]   ;;  %s5001_s1 = inlined_call_operand.vmem [shape: f32[2,1,8], index: 1, kind: input, shape index: {}]   ;;  %s5002_s2 = inlined_call_operand.vmem [shape: bf16[3,32,192], index: 2, kind: input, shape index: {}]   ;;  %s5003_s3 = inlined_call_operand.vmem [shape: bf16[2,64,32], index: 3, kind: input, shape index: {}]   ;;  %s5004_s4 = inlined_call_operand.hbm [shape: f32[3,8,128], index: 4, kind: input, shape index: {}]   ;;  %s5005_s5 = inlined_call_operand.hbm [shape: f32[16,128], index: 5, kind: output, shape index: {}]  }
   0x1   :  { %11 = vsyncpa [#allocation6], 0 }
   0x2   :  { %12 = vsyncpa [#allocation4], 0  ;;  %s4365_s18 = smov [#allocation2]   ;;  %s4293_s22 = scalar_lea.hbm %s5000_s0, 256 }
   0x3   :  { %s18_s19 = sshll.u32 %s4365_s18, 4  ;;  %p4294_p0 = scmp.ne.s32.totalorder %s5000_s0, %s4293_s22  ;;  %s19_s19 = int_to_ptr.vmem [resolvable:$true] %s18_s19 }
   0x4   :  { %p4297_p1 = scmp.lt.u32.totalorder %s4293_s22, %s5000_s0 }
   0x6   :  { %p4299_p2 = pnand %p4297_p1, %p4294_p0 }
   0x8   :  { %4302 = shalt.err (!%p4299_p2)
}
   0x9   :  { %s4303_s27 = scalar_lea.vmem %s19_s19, 256  ;;  %p4308_p4 = scmp.lt.s32.totalorder %s19_s19, %s19_s19 }
   0xa   :  { %p4304_p3 = scmp.ne.s32.totalorder %s19_s19, %s4303_s27  ;;  %p4309_p5 = scmp.lt.s32.totalorder %s4303_s27, %s4303_s27 }
   0xc   :  { %p4310_p6 = por %p4309_p5, %p4308_p4 }
   0xe   :  { %p4311_p7 = pnand %p4310_p6, %p4304_p3 }
  0x10   :  { %4314 = shalt.err (!%p4311_p7)
}
  0x11   :  { %s4366_s28 = smov 128   ;;  %s4367_s29 = smov 8  }
  0x12   :  { %24 = dma.hbm_to_vmem [thread:$0]  %s5000_s0, 256, %s19_s19, [#allocation3], %s4366_s28, %s4366_s28, %s4367_s29  }
  0x13   :  { %s4368_s7 = smov [#allocation5]   ;;  %s4315_s11 = scalar_lea.hbm %s5004_s4, 384 }
  0x14   :  { %s36_s8 = sshll.u32 %s4368_s7, 4  ;;  %p4316_p8 = scmp.ne.s32.totalorder %s5004_s4, %s4315_s11  ;;  %s37_s8 = int_to_ptr.vmem [resolvable:$true] %s36_s8 }
  0x15   :  { %p4319_p9 = scmp.lt.u32.totalorder %s4315_s11, %s5004_s4 }
  0x17   :  { %p4321_p10 = pnand %p4319_p9, %p4316_p8 }
  0x19   :  { %4324 = shalt.err (!%p4321_p10)
}
  0x1a   :  { %s4325_s16 = scalar_lea.vmem %s37_s8, 384  ;;  %p4330_p12 = scmp.lt.s32.totalorder %s37_s8, %s37_s8 }
  0x1b   :  { %p4326_p11 = scmp.ne.s32.totalorder %s37_s8, %s4325_s16  ;;  %p4331_p13 = scmp.lt.s32.totalorder %s4325_s16, %s4325_s16 }
  0x1d   :  { %p4332_p0 = por %p4331_p13, %p4330_p12 }
  0x1f   :  { %p4333_p1 = pnand %p4332_p0, %p4326_p11 }
  0x21   :  { %4336 = shalt.err (!%p4333_p1)
}
  0x22   :  { %42 = dma.hbm_to_vmem [thread:$0]  %s5004_s4, 384, %s37_s8, [#allocation6], %s4366_s28, %s4366_s28, %s4367_s29  }
  0x23   :  { %4359 = dma.done.wait [#allocation3], 256  }
  0x24   :  { %4360 = vsyncadd [#allocation3], 4294967040 }
  0x25   :  { %4361 = dma.done.wait [#allocation6], 384  }
  0x26   :  { %4362 = vsyncadd [#allocation6], 4294966912  ;;  %vm61_vm0 = vcmask 261120   ;;  %v50_v0 = vld [vmem:[#allocation2] sm:$0xff]  ;;  %v51_v1 = vld [vmem:[#allocation2 + $0x8] sm:$0xff]  ;;  %v4369_v15 = vmov 0.0   ;;  %v183_v55 = vlaneseq }
  0x27   :  { %v62_v2 = vsel %vm61_vm0, %v50_v0, 0.0  ;;  %v65_v3 = vsel %vm61_vm0, %v51_v1, 0.0  ;;  %v4179_v14 = vld [vmem:[%s5002_s2] ss:$8 sps:$4 sm:$0xff]   ;;  %3894 = vmatprep.subr.bf16.mxu0 %v4369_v15  ;;  %vm4370_vm1 = vmmov 0   ;;  %3902 = vmatprep.subr.mxu1 %v4369_v15  ;;  %s4371_s21 = smov 112  }
  0x28   :  { %63 = vadd.xlane.f32.xlu0 %v62_v2  ;;  %3898 = vmatprep.mubr.msk.bf16.mxu0 %vm4370_vm1, %v4369_v15  ;;  %v4180_v16 = vld [vmem:[%s5002_s2 + $0x10] ss:$8 sps:$4 sm:$0xff]   ;;  %v3677_v25 = vld [vmem:[#allocation5 + $0x10] ss:$0 sm:$0xff]  ;;  %v3678_v29 = vld [vmem:[#allocation5 + $0x11] ss:$0 sm:$0xff] }
  0x29   :  { %3895 = vmatpush3.bf16.msra.mxu0 %v4179_v14  ;;  %3904 = vmatprep.mubr.msk.f32.mxu1 %vm4370_vm1, %v4369_v15  ;;  %v3679_v34 = vld [vmem:[#allocation5] ss:$0 sm:$0xff]  ;;  %s4372_s22 = smov 120   ;;  %s4373_s23 = smov 104   ;;  %vm195_vm2 = vcmask 64512   ;;  %v184_v57 = vshrl.u32 %v183_v55, 7 }
  0x2a   :  { %3896 = vmatprep.subr.bf16.mxu0 %v4369_v15  ;;  %s4374_s24 = smov 96   ;;  %v52_v56 = vld [vmem:[%s5001_s1] sm:$0x1]  ;;  %v53_v60 = vld [vmem:[%s5001_s1 + $0x1] sm:$0x1]  ;;  %s4375_s1 = smov 64  }
  0x2b   :  { %vm54_vm3 = vcmp.eq.f32.partialorder %v52_v56, 0.0  ;;  %v185_v58 = vsub.s32 0, %v184_v57  ;;  %vm55_vm4 = vcmp.eq.f32.partialorder %v53_v60, 0.0  ;;  %s4376_s8 = smov 32   ;;  %s4377_s9 = smov 16   ;;  %vm1524_vm5 = vcmask 130048  }
  0x2c   :  { %66 = vadd.xlane.f32.xlu0 %v65_v3  ;;  %v56_v59 = vsel %vm54_vm3, -1e+09, %v4369_v15  ;;  %s4378_s12 = smov 24   ;;  %vm1527_vm6 = vcmask 195584   ;;  %vm1764_vm7 = vcmask 523264  }
  0x2d   :  { %3897 = vmatpush3.bf16.msra.mxu0 %v4180_v16  ;;  %v4566_v61 = vrot.slane %v56_v59, %v185_v58 }
  0x2e   :  { %3917 = vmatprep.subr.mxu0 %v4369_v15 }
  0xb5   :  { %v64_v4 = vpop.xlane.xlu0 %63 }
  0xb6   :  { %v69_v5 = vmul.f32 0.03125, %v64_v4 }
  0xb8   :  { %v71_v6 = vsub.f32 %v50_v0, %v69_v5 }
  0xb9   :  { %v67_v7 = vpop.xlane.xlu0 %66 }
  0xba   :  { %v70_v8 = vmul.f32 0.03125, %v67_v7  ;;  %v73_v9 = vmul.f32 %v71_v6, %v71_v6 }
  0xbc   :  { %v72_v10 = vsub.f32 %v51_v1, %v70_v8  ;;  %v75_v11 = vsel %vm61_vm0, %v73_v9, 0.0  ;;  %v57_v1 = vsel %vm55_vm4, -1e+09, %v4369_v15 }
  0xbd   :  { %76 = vadd.xlane.f32.xlu1 %v75_v11  ;;  %v4571_v3 = vrot.slane %v57_v1, %v185_v58 }
  0xbe   :  { %v74_v12 = vmul.f32 %v72_v10, %v72_v10 }
  0xc0   :  { %v78_v13 = vsel %vm61_vm0, %v74_v12, 0.0 }
  0xc1   :  { %79 = vadd.xlane.f32.xlu1 %v78_v13 }
 0x14a   :  { %v77_v17 = vpop.xlane.xlu1 %76 }
 0x14b   :  { %v81_v18 = vmul.f32 0.03125, %v77_v17 }
 0x14d   :  { %v83_v19 = vadd.f32 1e-12, %v81_v18 }
 0x14e   :  { %v80_v20 = vpop.xlane.xlu1 %79 }
 0x14f   :  { %4201 = vrsqrt.f32 %v83_v19  ;;  %v82_v21 = vmul.f32 0.03125, %v80_v20 }
 0x151   :  { %v84_v22 = vadd.f32 1e-12, %v82_v21 }
 0x153   :  { %4203 = vrsqrt.f32 %v84_v22 }
 0x159   :  { %v4202_v23 = vpop.eup %4201 }
 0x15a   :  { %v87_v24 = vmul.f32 %v4202_v23, %v71_v6 }
 0x15c   :  { %v93_v28 = vmul.f32 %v3677_v25, %v87_v24 }
 0x15d   :  { %v4204_v26 = vpop.eup %4203 }
 0x15e   :  { %v88_v27 = vmul.f32 %v4204_v26, %v72_v10  ;;  %v4458_v31 = vadd.f32 %v3678_v29, %v93_v28 }
 0x160   :  { %v94_v30 = vmul.f32 %v3677_v25, %v88_v27 }
 0x162   :  { %v4460_v32 = vadd.f32 %v3678_v29, %v94_v30 }
 0x164   :  { %v101_v33 = vpack.c.bf16 %v4460_v32, %v4458_v31 }
 0x166   :  { %3899 = vmatmul.mubr.msk.bf16.vlgmr.msra.gmra.mrb[0].mxu0 %vm61_vm0, %v101_v33 }
 0x167   :  { %3919 = vmatprep.mubr.msk.f32.mxu0 %vm4370_vm1, %v4369_v15 }
 0x239   :  { %v160_v35 = vpop.f32.mrb[0].mxu0 }
 0x23a   :  { %v4467_v36 = vadd.f32 %v3679_v34, %v160_v35  ;;  %v3900_v37 = vpop.f32.mrb[1].mxu0 }
 0x23b   :  { %v163_v38 = vpop.f32.mrb[2].mxu0 }
 0x23c   :  { %173 = vrot.lane.b32.xlu1 %v4467_v36, %s4371_s21  ;;  %169 = vrot.lane.b32.xlu0 %v4467_v36, %s4372_s22  ;;  %v3901_v39 = vpop.f32.mrb[3].mxu0  ;;  %v4473_v40 = vadd.f32 %v3679_v34, %v163_v38 }
 0x240   :  { %177 = vrot.lane.b32.xlu0 %v4467_v36, %s4373_s23  ;;  %171 = vrot.lane.b32.xlu1 %v4473_v40, %s4372_s22 }
 0x244   :  { %193 = vrot.lane.b32.xlu0 %v4467_v36, %s4374_s24  ;;  %175 = vrot.lane.b32.xlu1 %v4473_v40, %s4371_s21 }
 0x248   :  { %179 = vrot.lane.b32.xlu1 %v4473_v40, %s4373_s23 }
 0x24c   :  { %270 = vrot.lane.b32.xlu1 %v4473_v40, %s4374_s24 }
 0x2ae   :  { %v4487_v41 = vpop.permute.xlu1 %173  ;;  %v4489_v42 = vpop.permute.xlu0 %169 }
 0x2af   :  { %346 = vrot.lane.b32.xlu0 %v4489_v42, %s4374_s24 }
 0x2b2   :  { %v4493_v43 = vpop.permute.xlu0 %177  ;;  %v4495_v44 = vpop.permute.xlu1 %171 }
 0x2b3   :  { %498 = vrot.lane.b32.xlu0 %v4487_v41, %s4374_s24  ;;  %422 = vrot.lane.b32.xlu1 %v4495_v44, %s4374_s24 }
 0x2b6   :  { %v194_v45 = vpop.permute.xlu0 %193  ;;  %v4501_v46 = vpop.permute.xlu1 %175 }
 0x2b7   :  { %650 = vrot.lane.b32.xlu0 %v4493_v43, %s4374_s24  ;;  %3903 = vmatpush3.xpose.msk.msra.mxu1 %vm195_vm2, %v194_v45 }
 0x2b8   :  { %574 = vrot.lane.b32.xlu1 %v4501_v46, %s4374_s24  ;;  %3907 = vmatprep.subr.mxu1 %v4369_v15 }
 0x2ba   :  { %3905 = vmatmul.mubr.msk.f32.vlgmr.msra.gmra.mrb[0].mxu1 %vm195_vm2, %v4467_v36  ;;  %v4511_v47 = vpop.permute.xlu1 %179 }
 0x2bb   :  { %3909 = vmatprep.mubr.msk.f32.mxu1 %vm4370_vm1, %v4369_v15 }
 0x2bc   :  { %726 = vrot.lane.b32.xlu1 %v4511_v47, %s4374_s24 }
 0x2be   :  { %v271_v48 = vpop.permute.xlu1 %270 }
 0x2bf   :  { %3908 = vmatpush3.xpose.msk.msra.mxu1 %vm195_vm2, %v271_v48 }
 0x2c0   :  { %3912 = vmatprep.subr.mxu1 %v4369_v15 }
 0x2c2   :  { %3910 = vmatmul.mubr.msk.f32.vlgmr.msra.gmra.mrb[2].mxu1 %vm195_vm2, %v4473_v40 }
 0x2c3   :  { %3914 = vmatprep.mubr.msk.f32.mxu1 %vm4370_vm1, %v4369_v15 }
 0x321   :  { %v347_v49 = vpop.permute.xlu0 %346 }
 0x322   :  { %3913 = vmatpush3.xpose.msk.msra.mxu1 %vm195_vm2, %v347_v49 }
 0x323   :  { %3922 = vmatprep.subr.mxu1 %v4369_v15 }
 0x325   :  { %v499_v50 = vpop.permute.xlu0 %498  ;;  %3915 = vmatmul.mubr.msk.f32.vlgmr.msra.gmra.mrb[4].mxu1 %vm195_vm2, %v4489_v42  ;;  %v423_v51 = vpop.permute.xlu1 %422 }
 0x326   :  { %3918 = vmatpush3.xpose.msk.msra.mxu0 %vm195_vm2, %v423_v51  ;;  %3923 = vmatpush3.xpose.msk.msra.mxu1 %vm195_vm2, %v499_v50 }
 0x327   :  { %3924 = vmatprep.mubr.msk.f32.mxu1 %vm4370_vm1, %v4369_v15  ;;  %3927 = vmatprep.subr.mxu0 %v4369_v15 }
 0x328   :  { %3932 = vmatprep.subr.mxu1 %v4369_v15 }
 0x329   :  { %v651_v52 = vpop.permute.xlu0 %650  ;;  %3920 = vmatmul.mubr.msk.f32.vlgmr.msra.gmra.mrb[4].mxu0 %vm195_vm2, %v4495_v44  ;;  %3925 = vmatmul.mubr.msk.f32.vlgmr.msra.gmra.mrb[6].mxu1 %vm195_vm2, %v4487_v41 }
 0x32a   :  { %v575_v53 = vpop.permute.xlu1 %574  ;;  %3933 = vmatpush3.xpose.msk.msra.mxu1 %vm195_vm2, %v651_v52  ;;  %3929 = vmatprep.mubr.msk.f32.mxu0 %vm4370_vm1, %v4369_v15 }
 0x32b   :  { %3928 = vmatpush3.xpose.msk.msra.mxu0 %vm195_vm2, %v575_v53  ;;  %3934 = vmatprep.mubr.msk.f32.mxu1 %vm4370_vm1, %v4369_v15 }
 0x32c   :  { %3937 = vmatprep.subr.mxu0 %v4369_v15  ;;  %3942 = vmatprep.subr.mxu1 %v4369_v15 }
 0x32d   :  { %3935 = vmatmul.mubr.msk.f32.vlgmr.msra.gmra.mrb[8].mxu1 %vm195_vm2, %v4493_v43 }
 0x32e   :  { %3930 = vmatmul.mubr.msk.f32.vlgmr.msra.gmra.mrb[6].mxu0 %vm195_vm2, %v4501_v46  ;;  %v727_v54 = vpop.permute.xlu1 %726  ;;  %3944 = vmatprep.mubr.msk.f32.mxu1 %vm4370_vm1, %v4369_v15 }
 0x32f   :  { %3938 = vmatpush3.xpose.msk.msra.mxu0 %vm195_vm2, %v727_v54  ;;  %3939 = vmatprep.mubr.msk.f32.mxu0 %vm4370_vm1, %v4369_v15 }
 0x330   :  { %3947 = vmatprep.subr.mxu0 %v4369_v15 }
 0x332   :  { %3940 = vmatmul.mubr.msk.f32.vlgmr.msra.gmra.mrb[8].mxu0 %vm195_vm2, %v4511_v47 }
 0x333   :  { %3949 = vmatprep.mubr.msk.f32.mxu0 %vm4370_vm1, %v4369_v15 }
 0x38d   :  { %v266_v62 = vpop.f32.mrb[0].mxu1 }
 0x38e   :  { %v267_v63 = vadd.f32 %v266_v62, %v4566_v61  ;;  %v3906_v0 = vpop.f32.mrb[1].mxu1 }
 0x390   :  { %v802_v2 = vsel %vm195_vm2, %v267_v63, -inf }
 0x391   :  { %803 = vmax.xlane.f32.xlu0 %v802_v2 }
 0x395   :  { %v342_v4 = vpop.f32.mrb[2].mxu1 }
 0x396   :  { %v343_v5 = vadd.f32 %v342_v4, %v4571_v3  ;;  %v3911_v6 = vpop.f32.mrb[3].mxu1 }
 0x398   :  { %v805_v7 = vsel %vm195_vm2, %v343_v5, -inf }
 0x399   :  { %806 = vmax.xlane.f32.xlu1 %v805_v7 }
 0x3f8   :  { %v418_v8 = vpop.f32.mrb[4].mxu1 }
 0x3f9   :  { %v419_v9 = vadd.f32 %v418_v8, %v4566_v61  ;;  %v3916_v10 = vpop.f32.mrb[5].mxu1 }
 0x3fb   :  { %v808_v11 = vsel %vm195_vm2, %v419_v9, -inf }
 0x3fc   :  { %809 = vmax.xlane.f32.xlu0 %v808_v11  ;;  %v494_v12 = vpop.f32.mrb[4].mxu0  ;;  %v570_v13 = vpop.f32.mrb[6].mxu1 }
 0x3fd   :  { %v495_v14 = vadd.f32 %v494_v12, %v4571_v3  ;;  %v3921_v16 = vpop.f32.mrb[5].mxu0  ;;  %v3926_v17 = vpop.f32.mrb[7].mxu1  ;;  %v571_v18 = vadd.f32 %v570_v13, %v4566_v61 }
 0x3ff   :  { %v811_v19 = vsel %vm195_vm2, %v495_v14, -inf  ;;  %v814_v26 = vsel %vm195_vm2, %v571_v18, -inf }
 0x400   :  { %v722_v20 = vpop.f32.mrb[8].mxu1  ;;  %812 = vmax.xlane.f32.xlu0 %v811_v19 }
 0x401   :  { %v646_v21 = vpop.f32.mrb[6].mxu0  ;;  %v3936_v22 = vpop.f32.mrb[9].mxu1  ;;  %v723_v25 = vadd.f32 %v722_v20, %v4566_v61 }
 0x402   :  { %v647_v23 = vadd.f32 %v646_v21, %v4571_v3  ;;  %v3931_v24 = vpop.f32.mrb[7].mxu0 }
 0x403   :  { %v820_v33 = vsel %vm195_vm2, %v723_v25, -inf }
 0x404   :  { %815 = vmax.xlane.f32.xlu0 %v814_v26  ;;  %v817_v27 = vsel %vm195_vm2, %v647_v23, -inf }
 0x405   :  { %818 = vmax.xlane.f32.xlu1 %v817_v27  ;;  %v798_v28 = vpop.f32.mrb[8].mxu0 }
 0x406   :  { %v799_v29 = vadd.f32 %v798_v28, %v4571_v3  ;;  %v3941_v30 = vpop.f32.mrb[9].mxu0 }
 0x408   :  { %821 = vmax.xlane.f32.xlu0 %v820_v33  ;;  %v823_v34 = vsel %vm195_vm2, %v799_v29, -inf }
 0x409   :  { %824 = vmax.xlane.f32.xlu1 %v823_v34 }
 0x41a   :  { %966 = vrot.lane.b32.xlu1 %v4473_v40, %s4375_s1 }
 0x41e   :  { %1042 = vrot.lane.b32.xlu1 %v4489_v42, %s4375_s1  ;;  %890 = vrot.lane.b32.xlu0 %v4467_v36, %s4375_s1  ;;  %v804_v35 = vpop.xlane.xlu0 %803 }
 0x41f   :  { %v826_v37 = vsub.f32 %v267_v63, %v804_v35 }
 0x421   :  { %v834_v38 = vmul.f32 1.442695, %v826_v37 }
 0x422   :  { %1118 = vrot.lane.b32.xlu1 %v4495_v44, %s4375_s1  ;;  %1194 = vrot.lane.b32.xlu0 %v4487_v41, %s4375_s1 }
 0x423   :  { %4205 = vpow2.f32 %v834_v38 }
 0x426   :  { %1270 = vrot.lane.b32.xlu1 %v4501_v46, %s4375_s1  ;;  %v807_v39 = vpop.xlane.xlu1 %806 }
 0x427   :  { %v827_v40 = vsub.f32 %v343_v5, %v807_v39 }
 0x429   :  { %v836_v45 = vmul.f32 1.442695, %v827_v40 }
 0x42b   :  { %4207 = vpow2.f32 %v836_v45 }
 0x42d   :  { %v4599_v42 = vpop.eup %4205 }
 0x42e   :  { %v850_v36 = vsel %vm195_vm2, %v4599_v42, 0.0 }
 0x435   :  { %v4603_v44 = vpop.eup %4207 }
 0x436   :  { %v853_v41 = vsel %vm195_vm2, %v4603_v44, 0.0 }
 0x441   :  { %851 = vadd.xlane.f32.xlu0 %v850_v36 }
 0x44a   :  { %854 = vadd.xlane.f32.xlu1 %v853_v41 }
 0x489   :  { %v810_v46 = vpop.xlane.xlu0 %809 }
 0x48a   :  { %v828_v48 = vsub.f32 %v419_v9, %v810_v46 }
 0x48c   :  { %v838_v49 = vmul.f32 1.442695, %v828_v48 }
 0x48d   :  { %v813_v50 = vpop.xlane.xlu0 %812 }
 0x48e   :  { %4209 = vpow2.f32 %v838_v49  ;;  %v829_v51 = vsub.f32 %v495_v14, %v813_v50  ;;  %v4181_v50 = vld [vmem:[%s5002_s2] ss:$8 sps:$4 sm:$0xff]  }
 0x490   :  { %v840_v52 = vmul.f32 1.442695, %v829_v51 }
 0x491   :  { %v816_v53 = vpop.xlane.xlu0 %815 }
 0x492   :  { %4211 = vpow2.f32 %v840_v52  ;;  %v830_v54 = vsub.f32 %v571_v18, %v816_v53  ;;  %v819_v55 = vpop.xlane.xlu1 %818 }
 0x493   :  { %v831_v56 = vsub.f32 %v647_v23, %v819_v55 }
 0x494   :  { %v842_v57 = vmul.f32 1.442695, %v830_v54 }
 0x495   :  { %v844_v58 = vmul.f32 1.442695, %v831_v56  ;;  %v822_v59 = vpop.xlane.xlu0 %821 }
 0x496   :  { %4213 = vpow2.f32 %v842_v57  ;;  %v832_v60 = vsub.f32 %v723_v25, %v822_v59  ;;  %v825_v62 = vpop.xlane.xlu1 %824 }
 0x497   :  { %4215 = vpow2.f32 %v844_v58  ;;  %v833_v63 = vsub.f32 %v799_v29, %v825_v62 }
 0x498   :  { %v4210_v0 = vpop.eup %4209  ;;  %v846_v1 = vmul.f32 1.442695, %v832_v60 }
 0x499   :  { %v848_v2 = vmul.f32 1.442695, %v833_v63  ;;  %v891_v4 = vpop.permute.xlu0 %890  ;;  %v856_v5 = vsel %vm195_vm2, %v4210_v0, 0.0 }
 0x49a   :  { %4217 = vpow2.f32 %v846_v1  ;;  %v967_v6 = vpop.permute.xlu1 %966  ;;  %857 = vadd.xlane.f32.xlu0 %v856_v5  ;;  %3943 = vmatpush3.msra.mxu1 %v891_v4  ;;  %v4182_v5 = vld [vmem:[%s5002_s2 + $0x10] ss:$8 sps:$4 sm:$0xff]  }
 0x49b   :  { %4219 = vpow2.f32 %v848_v2  ;;  %3948 = vmatpush3.msra.mxu0 %v967_v6  ;;  %3952 = vmatprep.subr.mxu1 %v4369_v15 }
 0x49c   :  { %v4212_v7 = vpop.eup %4211  ;;  %3957 = vmatprep.subr.mxu0 %v4369_v15 }
 0x49d   :  { %v859_v8 = vsel %vm195_vm2, %v4212_v7, 0.0  ;;  %v1195_v19 = vpop.permute.xlu0 %1194 }
 0x49e   :  { %860 = vadd.xlane.f32.xlu1 %v859_v8  ;;  %v1043_v18 = vpop.permute.xlu1 %1042 }
 0x4a0   :  { %v4214_v9 = vpop.eup %4213 }
 0x4a1   :  { %v4216_v10 = vpop.eup %4215  ;;  %v862_v11 = vsel %vm195_vm2, %v4214_v9, 0.0 }
 0x4a2   :  { %863 = vadd.xlane.f32.xlu0 %v862_v11  ;;  %v865_v12 = vsel %vm195_vm2, %v4216_v10, 0.0  ;;  %v1119_v20 = vpop.permute.xlu1 %1118 }
 0x4a3   :  { %866 = vadd.xlane.f32.xlu1 %v865_v12 }
 0x4a4   :  { %v4613_v13 = vpop.eup %4217 }
 0x4a5   :  { %v4615_v14 = vpop.eup %4219  ;;  %v868_v16 = vsel %vm195_vm2, %v4613_v13, 0.0 }
 0x4a6   :  { %869 = vadd.xlane.f32.xlu0 %v868_v16  ;;  %v871_v17 = vsel %vm195_vm2, %v4615_v14, 0.0  ;;  %v1271_v22 = vpop.permute.xlu1 %1270 }
 0x4a7   :  { %872 = vadd.xlane.f32.xlu1 %v871_v17 }
 0x4b8   :  { %1422 = vrot.lane.b32.xlu1 %v4511_v47, %s4375_s1 }
 0x4bc   :  { %1346 = vrot.lane.b32.xlu0 %v4493_v43, %s4375_s1 }
 0x4c0   :  { %1550 = vrot.lane.b32.xlu0 %v4181_v50, %s4376_s8  ;;  %v4184_v50 = vld [vmem:[%s5002_s2 + $0x14] ss:$8 sps:$4 sm:$0xff]  }
 0x4ce   :  { %v852_v21 = vpop.xlane.xlu0 %851 }
 0x4cf   :  { %4221 = vrcp.f32 %v852_v21 }
 0x4d7   :  { %v855_v23 = vpop.xlane.xlu1 %854 }
 0x4d8   :  { %4223 = vrcp.f32 %v855_v23 }
 0x4d9   :  { %v4222_v24 = vpop.eup %4221 }
 0x4da   :  { %v882_v25 = vmul.f32 %v4222_v24, %v4599_v42 }
 0x4dc   :  { %3945 = vmatmul.mubr.msk.f32.vlgmr.msra.gmra.mrb[10].mxu1 %vm195_vm2, %v882_v25 }
 0x4dd   :  { %3953 = vmatpush3.msra.mxu1 %v1043_v18  ;;  %3954 = vmatprep.mubr.msk.f32.mxu1 %vm4370_vm1, %v4369_v15 }
 0x4de   :  { %3962 = vmatprep.subr.mxu1 %v4369_v15 }
 0x4e2   :  { %v4224_v43 = vpop.eup %4223 }
 0x4e3   :  { %v883_v47 = vmul.f32 %v4224_v43, %v4603_v44 }
 0x4e5   :  { %3950 = vmatmul.mubr.msk.f32.vlgmr.msra.gmra.mrb[10].mxu0 %vm195_vm2, %v883_v47 }
 0x4e6   :  { %3958 = vmatpush3.msra.mxu0 %v1119_v20  ;;  %3959 = vmatprep.mubr.msk.f32.mxu0 %vm4370_vm1, %v4369_v15 }
 0x4e7   :  { %3967 = vmatprep.subr.mxu0 %v4369_v15 }
 0x527   :  { %v858_v26 = vpop.xlane.xlu0 %857 }
 0x528   :  { %4225 = vrcp.f32 %v858_v26  ;;  %v3707_v26 = vld [vmem:[#allocation5 + $0x1] ss:$0 sm:$0xff] }
 0x52b   :  { %v861_v27 = vpop.xlane.xlu1 %860 }
 0x52c   :  { %4227 = vrcp.f32 %v861_v27 }
 0x52f   :  { %v864_v28 = vpop.xlane.xlu0 %863 }
 0x530   :  { %4229 = vrcp.f32 %v864_v28  ;;  %v867_v29 = vpop.xlane.xlu1 %866 }
 0x531   :  { %4231 = vrcp.f32 %v867_v29 }
 0x532   :  { %v4226_v30 = vpop.eup %4225 }
 0x533   :  { %v884_v33 = vmul.f32 %v4226_v30, %v4210_v0  ;;  %v870_v34 = vpop.xlane.xlu0 %869 }
 0x534   :  { %4233 = vrcp.f32 %v870_v34  ;;  %v873_v35 = vpop.xlane.xlu1 %872 }
 0x535   :  { %4235 = vrcp.f32 %v873_v35  ;;  %3955 = vmatmul.mubr.msk.f32.vlgmr.msra.gmra.mrb[12].mxu1 %vm195_vm2, %v884_v33 }
 0x536   :  { %v4228_v37 = vpop.eup %4227  ;;  %3963 = vmatpush3.msra.mxu1 %v1195_v19  ;;  %3964 = vmatprep.mubr.msk.f32.mxu1 %vm4370_vm1, %v4369_v15 }
 0x537   :  { %v885_v38 = vmul.f32 %v4228_v37, %v4212_v7  ;;  %3972 = vmatprep.subr.mxu1 %v4369_v15  ;;  %v1347_v36 = vpop.permute.xlu0 %1346 }
 0x538   :  { %v1423_v41 = vpop.permute.xlu1 %1422 }
 0x539   :  { %3960 = vmatmul.mubr.msk.f32.vlgmr.msra.gmra.mrb[12].mxu0 %vm195_vm2, %v885_v38 }
 0x53a   :  { %v4230_v39 = vpop.eup %4229  ;;  %3968 = vmatpush3.msra.mxu0 %v1271_v22  ;;  %3969 = vmatprep.mubr.msk.f32.mxu0 %vm4370_vm1, %v4369_v15 }
 0x53b   :  { %v4232_v40 = vpop.eup %4231  ;;  %v886_v45 = vmul.f32 %v4230_v39, %v4214_v9  ;;  %3977 = vmatprep.subr.mxu0 %v4369_v15  ;;  %v1551_v55 = vpop.permute.xlu0 %1550 }
 0x53c   :  { %v887_v42 = vmul.f32 %v4232_v40, %v4216_v10 }
 0x53d   :  { %3965 = vmatmul.mubr.msk.f32.vlgmr.msra.gmra.mrb[14].mxu1 %vm195_vm2, %v886_v45 }
 0x53e   :  { %v4234_v44 = vpop.eup %4233  ;;  %3970 = vmatmul.mubr.msk.f32.vlgmr.msra.gmra.mrb[14].mxu0 %vm195_vm2, %v887_v42  ;;  %3973 = vmatpush3.msra.mxu1 %v1347_v36 }
 0x53f   :  { %v4236_v46 = vpop.eup %4235  ;;  %v888_v48 = vmul.f32 %v4234_v44, %v4613_v13  ;;  %3978 = vmatpush3.msra.mxu0 %v1423_v41  ;;  %3974 = vmatprep.mubr.msk.f32.mxu1 %vm4370_vm1, %v4369_v15 }
 0x540   :  { %v889_v49 = vmul.f32 %v4236_v46, %v4615_v14  ;;  %3979 = vmatprep.mubr.msk.f32.mxu0 %vm4370_vm1, %v4369_v15  ;;  %3982 = vmatprep.subr.bf16.mxu1 %v4369_v15 }
 0x541   :  { %3975 = vmatmul.mubr.msk.f32.vlgmr.msra.gmra.mrb[16].mxu1 %vm195_vm2, %v888_v48  ;;  %3990 = vmatprep.subr.bf16.mxu0 %v4369_v15 }
 0x542   :  { %3980 = vmatmul.mubr.msk.f32.vlgmr.msra.gmra.mrb[16].mxu0 %vm195_vm2, %v889_v49  ;;  %3986 = vmatprep.mubr.msk.bf16.mxu1 %vm4370_vm1, %v4369_v15 }
 0x543   :  { %3994 = vmatprep.mubr.msk.bf16.mxu0 %vm4370_vm1, %v4369_v15  ;;  %3983 = vmatpush3.bf16.msra.mxu1 %v1551_v55 }
 0x544   :  { %3984 = vmatprep.subr.bf16.mxu1 %v4369_v15 }
 0x5af   :  { %v962_v51 = vpop.f32.mrb[10].mxu1 }
 0x5b0   :  { %v3946_v52 = vpop.f32.mrb[11].mxu1 }
 0x5b8   :  { %v1038_v53 = vpop.f32.mrb[10].mxu0 }
 0x5b9   :  { %v3951_v54 = vpop.f32.mrb[11].mxu0 }
 0x608   :  { %v1114_v56 = vpop.f32.mrb[12].mxu1 }
 0x609   :  { %v3956_v57 = vpop.f32.mrb[13].mxu1 }
 0x60c   :  { %v1190_v58 = vpop.f32.mrb[12].mxu0 }
 0x60d   :  { %v4149_v59 = vpack.i.bf16 %v1190_v58, %v1114_v56  ;;  %v3961_v60 = vpop.f32.mrb[13].mxu0 }
 0x60f   :  { %4150 = vrot.lane.b32.xlu1 %v4149_v59, %s4367_s29  ;;  %v3711_v59 = vld [vmem:[#allocation5 + $0x4] ss:$0 sm:$0xff] }
 0x610   :  { %v1266_v62 = vpop.f32.mrb[14].mxu1 }
 0x611   :  { %v1342_v63 = vpop.f32.mrb[14].mxu0  ;;  %v3966_v0 = vpop.f32.mrb[15].mxu1 }
 0x612   :  { %v4154_v1 = vpack.i.bf16 %v1342_v63, %v1266_v62  ;;  %v3971_v2 = vpop.f32.mrb[15].mxu0  ;;  %v3712_v0 = vld [vmem:[#allocation5 + $0x5] ss:$0 sm:$0xff] }
 0x614   :  { %4155 = vrot.lane.b32.xlu0 %v4154_v1, %s4377_s9  ;;  %v1418_v4 = vpop.f32.mrb[16].mxu1 }
 0x615   :  { %v1494_v6 = vpop.f32.mrb[16].mxu0  ;;  %v3976_v7 = vpop.f32.mrb[17].mxu1 }
 0x616   :  { %v4159_v8 = vpack.i.bf16 %v1494_v6, %v1418_v4  ;;  %v3981_v9 = vpop.f32.mrb[17].mxu0  ;;  %v4185_v6 = vld [vmem:[%s5003_s3] sm:$0xff]   ;;  %v4186_v7 = vld [vmem:[%s5003_s3 + $0x8] sm:$0xff]  }
 0x617   :  { %v4188_v9 = vld [vmem:[%s5003_s3 + $0x18] sm:$0xff]  }
 0x618   :  { %4160 = vrot.lane.b32.xlu1 %v4159_v8, %s4378_s12  ;;  %1552 = vrot.lane.b32.xlu0 %v4182_v5, %s4376_s8  ;;  %v4187_v8 = vld [vmem:[%s5003_s3 + $0x10] sm:$0xff]  }
 0x681   :  { %v4151_v10 = vpop.permute.xlu1 %4150 }
 0x682   :  { %v4153_v12 = vunpack.i.h.bf16 %v4151_v10  ;;  %v4152_v13 = vunpack.i.l.bf16 %v4151_v10  ;;  %v3713_v10 = vld [vmem:[#allocation5 + $0x2] ss:$0 sm:$0xff] }
 0x684   :  { %v1523_v19 = vsel %vm195_vm2, %v1038_v53, %v4153_v12  ;;  %v1522_v20 = vsel %vm195_vm2, %v962_v51, %v4152_v13 }
 0x686   :  { %v4156_v11 = vpop.permute.xlu0 %4155 }
 0x687   :  { %v4158_v14 = vunpack.i.h.bf16 %v4156_v11  ;;  %v4157_v16 = vunpack.i.l.bf16 %v4156_v11 }
 0x689   :  { %v1526_v23 = vsel %vm1524_vm5, %v1523_v19, %v4158_v14  ;;  %v1525_v24 = vsel %vm1524_vm5, %v1522_v20, %v4157_v16 }
 0x68a   :  { %v4161_v17 = vpop.permute.xlu1 %4160  ;;  %v1553_v18 = vpop.permute.xlu0 %1552 }
 0x68b   :  { %v4163_v21 = vunpack.i.h.bf16 %v4161_v17  ;;  %v4162_v22 = vunpack.i.l.bf16 %v4161_v17  ;;  %3985 = vmatpush3.bf16.msra.mxu1 %v1553_v18 }
 0x68c   :  { %3998 = vmatprep.subr.bf16.mxu1 %v4369_v15 }
 0x68d   :  { %v1529_v25 = vsel %vm1527_vm6, %v1526_v23, %v4163_v21  ;;  %v1528_v43 = vsel %vm1527_vm6, %v1525_v24, %v4162_v22 }
 0x68e   :  { %v1530_v47 = vpack.c.bf16 %v1529_v25, %v1528_v43 }
 0x690   :  { %3987 = vmatmul.mubr.msk.bf16.vlgmr.msra.gmra.mrb[20].mxu1 %vm61_vm0, %v1530_v47 }
 0x691   :  { %4006 = vmatprep.mubr.msk.bf16.mxu1 %vm4370_vm1, %v4369_v15  ;;  %3999 = vmatpush3.bf16.msra.mxu1 %v4185_v6 }
 0x692   :  { %4000 = vmatprep.subr.bf16.mxu1 %v4369_v15 }
 0x695   :  { %4001 = vmatpush3.bf16.msra.mxu1 %v4186_v7 }
 0x696   :  { %4002 = vmatprep.subr.bf16.mxu1 %v4369_v15 }
 0x699   :  { %4003 = vmatpush3.bf16.msra.mxu1 %v4187_v8 }
 0x69a   :  { %4004 = vmatprep.subr.bf16.mxu1 %v4369_v15 }
 0x69d   :  { %4005 = vmatpush3.bf16.msra.mxu1 %v4188_v9 }
 0x69e   :  { %4028 = vmatprep.subr.mxu1 %v4369_v15 }
 0x763   :  { %v1593_v27 = vpop.f32.mrb[20].mxu1 }
 0x764   :  { %v1594_v28 = vadd.f32 %v3707_v26, %v1593_v27  ;;  %v3988_v29 = vpop.f32.mrb[21].mxu1 }
 0x765   :  { %v1596_v30 = vpop.f32.mrb[22].mxu1 }
 0x766   :  { %v1597_v33 = vadd.f32 %v3707_v26, %v1596_v30  ;;  %v3989_v34 = vpop.f32.mrb[23].mxu1  ;;  %v1600_v35 = vadd.f32 %v1594_v28, %v4458_v31 }
 0x768   :  { %v1604_v37 = vsel %vm61_vm0, %v1600_v35, 0.0  ;;  %v1601_v38 = vadd.f32 %v1597_v33, %v4460_v32  ;;  %v4183_v32 = vld [vmem:[%s5002_s2 + $0x4] ss:$8 sps:$4 sm:$0xff]  }
 0x769   :  { %1605 = vadd.xlane.f32.xlu1 %v1604_v37  ;;  %3991 = vmatpush3.bf16.msra.mxu0 %v4183_v32 }
 0x76a   :  { %v1607_v39 = vsel %vm61_vm0, %v1601_v38, 0.0  ;;  %3992 = vmatprep.subr.bf16.mxu0 %v4369_v15 }
 0x76b   :  { %1608 = vadd.xlane.f32.xlu0 %v1607_v39 }
 0x76d   :  { %3993 = vmatpush3.bf16.msra.mxu0 %v4184_v50 }
 0x76e   :  { %4010 = vmatprep.subr.bf16.mxu0 %v4369_v15 }
 0x7f6   :  { %v1606_v40 = vpop.xlane.xlu1 %1605 }
 0x7f7   :  { %v1610_v45 = vmul.f32 0.03125, %v1606_v40 }
 0x7f8   :  { %v1609_v42 = vpop.xlane.xlu0 %1608 }
 0x7f9   :  { %v1612_v36 = vsub.f32 %v1600_v35, %v1610_v45  ;;  %v1611_v44 = vmul.f32 0.03125, %v1609_v42 }
 0x7fb   :  { %v1613_v41 = vsub.f32 %v1601_v38, %v1611_v44  ;;  %v1614_v46 = vmul.f32 %v1612_v36, %v1612_v36  ;;  %v3717_v38 = vld [vmem:[#allocation5 + $0x3] ss:$0 sm:$0xff] }
 0x7fd   :  { %v1616_v48 = vsel %vm61_vm0, %v1614_v46, 0.0  ;;  %v1615_v49 = vmul.f32 %v1613_v41, %v1613_v41 }
 0x7fe   :  { %1617 = vadd.xlane.f32.xlu0 %v1616_v48 }
 0x7ff   :  { %v1619_v31 = vsel %vm61_vm0, %v1615_v49, 0.0 }
 0x802   :  { %1620 = vadd.xlane.f32.xlu0 %v1619_v31 }
 0x88b   :  { %v1618_v51 = vpop.xlane.xlu0 %1617 }
 0x88c   :  { %v1622_v52 = vmul.f32 0.03125, %v1618_v51 }
 0x88e   :  { %v1624_v53 = vadd.f32 1e-12, %v1622_v52 }
 0x88f   :  { %v1621_v54 = vpop.xlane.xlu0 %1620 }
 0x890   :  { %4237 = vrsqrt.f32 %v1624_v53  ;;  %v1623_v55 = vmul.f32 0.03125, %v1621_v54 }
 0x892   :  { %v1625_v56 = vadd.f32 1e-12, %v1623_v55 }
 0x894   :  { %4239 = vrsqrt.f32 %v1625_v56 }
 0x89a   :  { %v4238_v57 = vpop.eup %4237 }
 0x89b   :  { %v1628_v58 = vmul.f32 %v4238_v57, %v1612_v36 }
 0x89d   :  { %v1634_v62 = vmul.f32 %v3711_v59, %v1628_v58  ;;  %v4189_v58 = vld [vmem:[%s5002_s2 + $0x20] ss:$8 sps:$4 sm:$0xff]  }
 0x89e   :  { %v4240_v60 = vpop.eup %4239 }
 0x89f   :  { %v1629_v63 = vmul.f32 %v4240_v60, %v1613_v41  ;;  %v1640_v2 = vadd.f32 %v3712_v0, %v1634_v62 }
 0x8a1   :  { %v1635_v1 = vmul.f32 %v3711_v59, %v1629_v63  ;;  %v4190_v59 = vld [vmem:[%s5002_s2 + $0x30] ss:$8 sps:$4 sm:$0xff]  }
 0x8a3   :  { %v1641_v4 = vadd.f32 %v3712_v0, %v1635_v1 }
 0x8a5   :  { %v1642_v5 = vpack.c.bf16 %v1641_v4, %v1640_v2 }
 0x8a7   :  { %3995 = vmatmul.mubr.msk.bf16.vlgmr.msra.gmra.mrb[20].mxu0 %vm61_vm0, %v1642_v5  ;;  %v3723_v5 = vld [vmem:[#allocation5 + $0x6] ss:$0 sm:$0xff] }
 0x8a8   :  { %4014 = vmatprep.mubr.msk.bf16.mxu0 %vm4370_vm1, %v4369_v15  ;;  %4011 = vmatpush3.bf16.msra.mxu0 %v4189_v58 }
 0x8a9   :  { %4012 = vmatprep.subr.bf16.mxu0 %v4369_v15 }
 0x8ac   :  { %4013 = vmatpush3.bf16.msra.mxu0 %v4190_v59 }
 0x8ad   :  { %4018 = vmatprep.subr.mxu0 %v4369_v15 }
 0x97a   :  { %v1701_v11 = vpop.f32.mrb[20].mxu0 }
 0x97b   :  { %v1702_v12 = vadd.f32 %v3713_v10, %v1701_v11  ;;  %v3996_v13 = vpop.f32.mrb[21].mxu0 }
 0x97c   :  { %v1704_v14 = vpop.f32.mrb[22].mxu0 }
 0x97d   :  { %v1710_v16 = vmul.f32 0.044715, %v1702_v12  ;;  %v1705_v17 = vadd.f32 %v3713_v10, %v1704_v14  ;;  %v3997_v18 = vpop.f32.mrb[23].mxu0  ;;  %v1708_v29 = vmul.f32 0.5, %v1702_v12  ;;  %v3724_v10 = vld [vmem:[#allocation5 + $0x7] ss:$0 sm:$0xff] }
 0x97f   :  { %v1712_v19 = vmul.f32 %v1710_v16, %v1702_v12  ;;  %v1711_v20 = vmul.f32 0.044715, %v1705_v17  ;;  %v1709_v30 = vmul.f32 0.5, %v1705_v17  ;;  %v3729_v16 = vld [vmem:[#allocation5 + $0x8] ss:$0 sm:$0xff] }
 0x981   :  { %v1714_v21 = vmul.f32 %v1712_v19, %v1702_v12  ;;  %v1713_v22 = vmul.f32 %v1711_v20, %v1705_v17 }
 0x983   :  { %v1716_v23 = vadd.f32 %v1714_v21, %v1702_v12  ;;  %v1715_v24 = vmul.f32 %v1713_v22, %v1705_v17 }
 0x985   :  { %v1718_v25 = vmul.f32 0.7978846, %v1716_v23  ;;  %v1717_v43 = vadd.f32 %v1715_v24, %v1705_v17 }
 0x987   :  { %4241 = vtanh.f32 %v1718_v25  ;;  %v1719_v47 = vmul.f32 0.7978846, %v1717_v43 }
 0x989   :  { %4243 = vtanh.f32 %v1719_v47 }
 0x991   :  { %v4242_v26 = vpop.eup %4241 }
 0x992   :  { %v1722_v27 = vadd.f32 1.0, %v4242_v26 }
 0x993   :  { %v4244_v28 = vpop.eup %4243 }
 0x994   :  { %v1723_v33 = vadd.f32 1.0, %v4244_v28  ;;  %v1724_v34 = vmul.f32 %v1722_v27, %v1708_v29 }
 0x996   :  { %v1725_v35 = vmul.f32 %v1723_v33, %v1709_v30 }
 0x998   :  { %v1726_v37 = vpack.c.bf16 %v1725_v35, %v1724_v34 }
 0x99a   :  { %4007 = vmatmul.mubr.msk.bf16.vlgmr.msra.gmra.mrb[24].mxu1 %vm1764_vm7, %v1726_v37 }
 0x99b   :  { %4030 = vmatprep.mubr.msk.f32.mxu1 %vm4370_vm1, %v4369_v15 }
 0xa6d   :  { %v1802_v39 = vpop.f32.mrb[24].mxu1 }
 0xa6e   :  { %v1803_v40 = vadd.f32 %v3717_v38, %v1802_v39  ;;  %v4008_v45 = vpop.f32.mrb[25].mxu1 }
 0xa6f   :  { %v1805_v42 = vpop.f32.mrb[26].mxu1 }
 0xa70   :  { %v1806_v36 = vadd.f32 %v3717_v38, %v1805_v42  ;;  %v4009_v44 = vpop.f32.mrb[27].mxu1  ;;  %v1809_v41 = vadd.f32 %v1803_v40, %v1640_v2 }
 0xa72   :  { %v1813_v46 = vsel %vm61_vm0, %v1809_v41, 0.0  ;;  %v1810_v48 = vadd.f32 %v1806_v36, %v1641_v4 }
 0xa73   :  { %1814 = vadd.xlane.f32.xlu1 %v1813_v46 }
 0xa74   :  { %v1816_v49 = vsel %vm61_vm0, %v1810_v48, 0.0 }
 0xa75   :  { %1817 = vadd.xlane.f32.xlu0 %v1816_v49 }
 0xb00   :  { %v1815_v31 = vpop.xlane.xlu1 %1814 }
 0xb01   :  { %v1819_v32 = vmul.f32 0.03125, %v1815_v31 }
 0xb02   :  { %v1818_v50 = vpop.xlane.xlu0 %1817 }
 0xb03   :  { %v1821_v51 = vsub.f32 %v1809_v41, %v1819_v32  ;;  %v1820_v52 = vmul.f32 0.03125, %v1818_v50 }
 0xb05   :  { %v1822_v53 = vsub.f32 %v1810_v48, %v1820_v52  ;;  %v1823_v54 = vmul.f32 %v1821_v51, %v1821_v51 }
 0xb07   :  { %v1825_v55 = vsel %vm61_vm0, %v1823_v54, 0.0  ;;  %v1824_v56 = vmul.f32 %v1822_v53, %v1822_v53 }
 0xb08   :  { %1826 = vadd.xlane.f32.xlu1 %v1825_v55 }
 0xb09   :  { %v1828_v57 = vsel %vm61_vm0, %v1824_v56, 0.0 }
 0xb0a   :  { %1829 = vadd.xlane.f32.xlu0 %v1828_v57 }
 0xb95   :  { %v1827_v60 = vpop.xlane.xlu1 %1826 }
 0xb96   :  { %v1831_v62 = vmul.f32 0.03125, %v1827_v60 }
 0xb97   :  { %v1830_v63 = vpop.xlane.xlu0 %1829 }
 0xb98   :  { %v1833_v0 = vadd.f32 1e-12, %v1831_v62  ;;  %v1832_v1 = vmul.f32 0.03125, %v1830_v63 }
 0xb9a   :  { %4245 = vrsqrt.f32 %v1833_v0  ;;  %v1834_v2 = vadd.f32 1e-12, %v1832_v1 }
 0xb9c   :  { %4247 = vrsqrt.f32 %v1834_v2 }
 0xba4   :  { %v4246_v4 = vpop.eup %4245 }
 0xba5   :  { %v1837_v6 = vmul.f32 %v4246_v4, %v1821_v51 }
 0xba6   :  { %v4248_v7 = vpop.eup %4247 }
 0xba7   :  { %v1843_v8 = vmul.f32 %v3723_v5, %v1837_v6  ;;  %v1838_v9 = vmul.f32 %v4248_v7, %v1822_v53 }
 0xba9   :  { %v1844_v11 = vmul.f32 %v3723_v5, %v1838_v9  ;;  %v4729_v12 = vadd.f32 %v3724_v10, %v1843_v8 }
 0xbab   :  { %v4731_v13 = vadd.f32 %v3724_v10, %v1844_v11 }
 0xbad   :  { %v1851_v14 = vpack.c.bf16 %v4731_v13, %v4729_v12 }
 0xbaf   :  { %4015 = vmatmul.mubr.msk.bf16.vlgmr.msra.gmra.mrb[24].mxu0 %vm61_vm0, %v1851_v14 }
 0xbb0   :  { %4020 = vmatprep.mubr.msk.f32.mxu0 %vm4370_vm1, %v4369_v15 }
 0xc82   :  { %v1912_v17 = vpop.f32.mrb[24].mxu0 }
 0xc83   :  { %v4738_v18 = vadd.f32 %v3729_v16, %v1912_v17  ;;  %v4016_v19 = vpop.f32.mrb[25].mxu0 }
 0xc84   :  { %v1915_v20 = vpop.f32.mrb[26].mxu0 }
 0xc85   :  { %v4740_v21 = vadd.f32 %v3729_v16, %v1915_v20  ;;  %1921 = vrot.lane.b32.xlu1 %v4738_v18, %s4372_s22  ;;  %v4017_v22 = vpop.f32.mrb[27].mxu0 }
 0xc87   :  { %1923 = vrot.lane.b32.xlu0 %v4740_v21, %s4372_s22 }
 0xc89   :  { %1925 = vrot.lane.b32.xlu1 %v4738_v18, %s4371_s21 }
 0xc8b   :  { %1931 = vrot.lane.b32.xlu0 %v4740_v21, %s4373_s23 }
 0xc8d   :  { %1927 = vrot.lane.b32.xlu1 %v4740_v21, %s4371_s21 }
 0xc8f   :  { %2009 = vrot.lane.b32.xlu0 %v4740_v21, %s4374_s24 }
 0xc91   :  { %1929 = vrot.lane.b32.xlu1 %v4738_v18, %s4373_s23 }
 0xc95   :  { %1933 = vrot.lane.b32.xlu1 %v4738_v18, %s4374_s24 }
 0xcf7   :  { %v4758_v23 = vpop.permute.xlu1 %1921 }
 0xcf8   :  { %2085 = vrot.lane.b32.xlu1 %v4758_v23, %s4374_s24 }
 0xcf9   :  { %v4762_v24 = vpop.permute.xlu0 %1923 }
 0xcfa   :  { %2161 = vrot.lane.b32.xlu0 %v4762_v24, %s4374_s24 }
 0xcfb   :  { %v4766_v25 = vpop.permute.xlu1 %1925 }
 0xcfc   :  { %2237 = vrot.lane.b32.xlu1 %v4766_v25, %s4374_s24 }
 0xcfd   :  { %v4774_v47 = vpop.permute.xlu0 %1931 }
 0xcff   :  { %v4770_v43 = vpop.permute.xlu1 %1927 }
 0xd00   :  { %2313 = vrot.lane.b32.xlu0 %v4770_v43, %s4374_s24 }
 0xd01   :  { %v2010_v28 = vpop.permute.xlu0 %2009 }
 0xd03   :  { %v4776_v26 = vpop.permute.xlu1 %1929 }
 0xd04   :  { %2389 = vrot.lane.b32.xlu1 %v4776_v26, %s4374_s24  ;;  %2465 = vrot.lane.b32.xlu0 %v4774_v47, %s4374_s24 }
 0xd07   :  { %v1934_v27 = vpop.permute.xlu1 %1933 }
 0xd08   :  { %4019 = vmatpush3.xpose.msk.msra.mxu0 %vm195_vm2, %v1934_v27 }
 0xd09   :  { %4023 = vmatprep.subr.mxu0 %v4369_v15 }
 0xd0b   :  { %4021 = vmatmul.mubr.msk.f32.vlgmr.msra.gmra.mrb[18].mxu0 %vm195_vm2, %v4738_v18 }
 0xd0c   :  { %4024 = vmatpush3.xpose.msk.msra.mxu0 %vm195_vm2, %v2010_v28  ;;  %4025 = vmatprep.mubr.msk.f32.mxu0 %vm4370_vm1, %v4369_v15 }
 0xd0d   :  { %4033 = vmatprep.subr.mxu0 %v4369_v15 }
 0xd0f   :  { %4026 = vmatmul.mubr.msk.f32.vlgmr.msra.gmra.mrb[28].mxu0 %vm195_vm2, %v4740_v21 }
 0xd10   :  { %4035 = vmatprep.mubr.msk.f32.mxu0 %vm4370_vm1, %v4369_v15 }
 0xd6a   :  { %v2086_v29 = vpop.permute.xlu1 %2085 }
 0xd6b   :  { %4029 = vmatpush3.xpose.msk.msra.mxu1 %vm195_vm2, %v2086_v29 }
 0xd6c   :  { %v2162_v30 = vpop.permute.xlu0 %2161  ;;  %4038 = vmatprep.subr.mxu1 %v4369_v15 }
 0xd6d   :  { %4034 = vmatpush3.xpose.msk.msra.mxu0 %vm195_vm2, %v2162_v30 }
 0xd6e   :  { %4031 = vmatmul.mubr.msk.f32.vlgmr.msra.gmra.mrb[18].mxu1 %vm195_vm2, %v4758_v23  ;;  %v2238_v33 = vpop.permute.xlu1 %2237  ;;  %4043 = vmatprep.subr.mxu0 %v4369_v15 }
 0xd6f   :  { %4039 = vmatpush3.xpose.msk.msra.mxu1 %vm195_vm2, %v2238_v33  ;;  %4040 = vmatprep.mubr.msk.f32.mxu1 %vm4370_vm1, %v4369_v15 }
 0xd70   :  { %4036 = vmatmul.mubr.msk.f32.vlgmr.msra.gmra.mrb[30].mxu0 %vm195_vm2, %v4762_v24  ;;  %4048 = vmatprep.subr.mxu1 %v4369_v15 }
 0xd71   :  { %4045 = vmatprep.mubr.msk.f32.mxu0 %vm4370_vm1, %v4369_v15 }
 0xd72   :  { %4041 = vmatmul.mubr.msk.f32.vlgmr.msra.gmra.mrb[28].mxu1 %vm195_vm2, %v4766_v25  ;;  %v2314_v34 = vpop.permute.xlu0 %2313 }
 0xd73   :  { %4044 = vmatpush3.xpose.msk.msra.mxu0 %vm195_vm2, %v2314_v34  ;;  %4050 = vmatprep.mubr.msk.f32.mxu1 %vm4370_vm1, %v4369_v15 }
 0xd74   :  { %4053 = vmatprep.subr.mxu0 %v4369_v15 }
 0xd76   :  { %v2390_v35 = vpop.permute.xlu1 %2389  ;;  %4046 = vmatmul.mubr.msk.f32.vlgmr.msra.gmra.mrb[32].mxu0 %vm195_vm2, %v4770_v43  ;;  %v2466_v37 = vpop.permute.xlu0 %2465 }
 0xd77   :  { %4049 = vmatpush3.xpose.msk.msra.mxu1 %vm195_vm2, %v2390_v35  ;;  %4054 = vmatpush3.xpose.msk.msra.mxu0 %vm195_vm2, %v2466_v37 }
 0xd78   :  { %4055 = vmatprep.mubr.msk.f32.mxu0 %vm4370_vm1, %v4369_v15  ;;  %4058 = vmatprep.subr.mxu1 %v4369_v15 }
 0xd79   :  { %4063 = vmatprep.subr.mxu0 %v4369_v15 }
 0xd7a   :  { %4051 = vmatmul.mubr.msk.f32.vlgmr.msra.gmra.mrb[30].mxu1 %vm195_vm2, %v4776_v26  ;;  %4056 = vmatmul.mubr.msk.f32.vlgmr.msra.gmra.mrb[34].mxu0 %vm195_vm2, %v4774_v47 }
 0xd7b   :  { %4065 = vmatprep.mubr.msk.f32.mxu0 %vm4370_vm1, %v4369_v15  ;;  %4060 = vmatprep.mubr.msk.f32.mxu1 %vm4370_vm1, %v4369_v15 }
 0xdde   :  { %v2005_v38 = vpop.f32.mrb[18].mxu0 }
 0xddf   :  { %v2006_v39 = vadd.f32 %v2005_v38, %v4566_v61  ;;  %v4022_v40 = vpop.f32.mrb[19].mxu0 }
 0xde1   :  { %v2541_v45 = vsel %vm195_vm2, %v2006_v39, -inf }
 0xde2   :  { %2542 = vmax.xlane.f32.xlu1 %v2541_v45  ;;  %v2081_v42 = vpop.f32.mrb[28].mxu0 }
 0xde3   :  { %v2082_v36 = vadd.f32 %v2081_v42, %v4571_v3  ;;  %v4027_v44 = vpop.f32.mrb[29].mxu0 }
 0xde5   :  { %v2544_v41 = vsel %vm195_vm2, %v2082_v36, -inf }
 0xde6   :  { %2545 = vmax.xlane.f32.xlu0 %v2544_v41 }
 0xe41   :  { %v2157_v46 = vpop.f32.mrb[18].mxu1 }
 0xe42   :  { %v2158_v48 = vadd.f32 %v2157_v46, %v4566_v61  ;;  %v4032_v49 = vpop.f32.mrb[19].mxu1 }
 0xe43   :  { %v2233_v31 = vpop.f32.mrb[30].mxu0 }
 0xe44   :  { %v2234_v32 = vadd.f32 %v2233_v31, %v4571_v3  ;;  %v4037_v50 = vpop.f32.mrb[31].mxu0  ;;  %v2547_v51 = vsel %vm195_vm2, %v2158_v48, -inf }
 0xe45   :  { %v2309_v52 = vpop.f32.mrb[28].mxu1  ;;  %2548 = vmax.xlane.f32.xlu0 %v2547_v51 }
 0xe46   :  { %v2310_v53 = vadd.f32 %v2309_v52, %v4566_v61  ;;  %v4042_v54 = vpop.f32.mrb[29].mxu1  ;;  %v2550_v56 = vsel %vm195_vm2, %v2234_v32, -inf }
 0xe48   :  { %v2553_v55 = vsel %vm195_vm2, %v2310_v53, -inf }
 0xe49   :  { %2554 = vmax.xlane.f32.xlu1 %v2553_v55  ;;  %2551 = vmax.xlane.f32.xlu0 %v2550_v56  ;;  %v2385_v57 = vpop.f32.mrb[32].mxu0 }
 0xe4a   :  { %v2386_v58 = vadd.f32 %v2385_v57, %v4571_v3  ;;  %v4047_v59 = vpop.f32.mrb[33].mxu0 }
 0xe4c   :  { %v2556_v60 = vsel %vm195_vm2, %v2386_v58, -inf }
 0xe4d   :  { %v2461_v62 = vpop.f32.mrb[30].mxu1  ;;  %2557 = vmax.xlane.f32.xlu0 %v2556_v60  ;;  %v2537_v63 = vpop.f32.mrb[34].mxu0 }
 0xe4e   :  { %v2462_v0 = vadd.f32 %v2461_v62, %v4566_v61  ;;  %v2538_v1 = vadd.f32 %v2537_v63, %v4571_v3  ;;  %v4052_v2 = vpop.f32.mrb[31].mxu1  ;;  %v4057_v4 = vpop.f32.mrb[35].mxu0 }
 0xe50   :  { %v2559_v5 = vsel %vm195_vm2, %v2462_v0, -inf  ;;  %v2562_v6 = vsel %vm195_vm2, %v2538_v1, -inf }
 0xe51   :  { %2560 = vmax.xlane.f32.xlu1 %v2559_v5  ;;  %2563 = vmax.xlane.f32.xlu0 %v2562_v6 }
 0xe62   :  { %2629 = vrot.lane.b32.xlu1 %v4738_v18, %s4375_s1 }
 0xe66   :  { %2781 = vrot.lane.b32.xlu1 %v4758_v23, %s4375_s1 }
 0xe67   :  { %2705 = vrot.lane.b32.xlu0 %v4740_v21, %s4375_s1 }
 0xe6a   :  { %2857 = vrot.lane.b32.xlu1 %v4762_v24, %s4375_s1 }
 0xe6b   :  { %3009 = vrot.lane.b32.xlu0 %v4770_v43, %s4375_s1 }
 0xe6e   :  { %2933 = vrot.lane.b32.xlu1 %v4766_v25, %s4375_s1 }
 0xe6f   :  { %v2543_v8 = vpop.xlane.xlu1 %2542 }
 0xe70   :  { %v2565_v9 = vsub.f32 %v2006_v39, %v2543_v8 }
 0xe72   :  { %v2573_v10 = vmul.f32 1.442695, %v2565_v9 }
 0xe73   :  { %v2546_v61 = vpop.xlane.xlu0 %2545 }
 0xe74   :  { %v2566_v3 = vsub.f32 %v2082_v36, %v2546_v61 }
 0xe76   :  { %v2575_v7 = vmul.f32 1.442695, %v2566_v3 }
 0xe78   :  { %4249 = vpow2.f32 %v2575_v7 }
 0xe79   :  { %4251 = vpow2.f32 %v2573_v10 }
 0xe82   :  { %v4858_v11 = vpop.eup %4249 }
 0xe83   :  { %v2592_v14 = vsel %vm195_vm2, %v4858_v11, 0.0  ;;  %v4862_v16 = vpop.eup %4251 }
 0xe84   :  { %v2589_v17 = vsel %vm195_vm2, %v4862_v16, 0.0 }
 0xe8a   :  { %2593 = vadd.xlane.f32.xlu0 %v2592_v14 }
 0xe92   :  { %2590 = vadd.xlane.f32.xlu1 %v2589_v17 }
 0xed2   :  { %v2549_v18 = vpop.xlane.xlu0 %2548 }
 0xed3   :  { %v2567_v19 = vsub.f32 %v2158_v48, %v2549_v18 }
 0xed5   :  { %v2577_v20 = vmul.f32 1.442695, %v2567_v19  ;;  %v4191_v19 = vld [vmem:[%s5002_s2 + $0x20] ss:$8 sps:$4 sm:$0xff]  }
 0xed6   :  { %v2555_v21 = vpop.xlane.xlu1 %2554  ;;  %v2552_v22 = vpop.xlane.xlu0 %2551 }
 0xed7   :  { %4253 = vpow2.f32 %v2577_v20  ;;  %v2569_v23 = vsub.f32 %v2310_v53, %v2555_v21  ;;  %v2568_v24 = vsub.f32 %v2234_v32, %v2552_v22 }
 0xed9   :  { %v2581_v25 = vmul.f32 1.442695, %v2569_v23  ;;  %v2579_v43 = vmul.f32 1.442695, %v2568_v24 }
 0xeda   :  { %v2558_v27 = vpop.xlane.xlu0 %2557 }
 0xedb   :  { %4255 = vpow2.f32 %v2581_v25  ;;  %v2570_v28 = vsub.f32 %v2386_v58, %v2558_v27 }
 0xedc   :  { %4257 = vpow2.f32 %v2579_v43 }
 0xedd   :  { %v2583_v29 = vmul.f32 1.442695, %v2570_v28 }
 0xede   :  { %v2561_v30 = vpop.xlane.xlu1 %2560  ;;  %v2564_v33 = vpop.xlane.xlu0 %2563 }
 0xedf   :  { %4259 = vpow2.f32 %v2583_v29  ;;  %v2571_v34 = vsub.f32 %v2462_v0, %v2561_v30  ;;  %v2572_v35 = vsub.f32 %v2538_v1, %v2564_v33 }
 0xee1   :  { %v4254_v37 = vpop.eup %4253  ;;  %v2585_v38 = vmul.f32 1.442695, %v2571_v34  ;;  %v2587_v39 = vmul.f32 1.442695, %v2572_v35 }
 0xee2   :  { %v2630_v40 = vpop.permute.xlu1 %2629  ;;  %v2706_v45 = vpop.permute.xlu0 %2705  ;;  %v2595_v42 = vsel %vm195_vm2, %v4254_v37, 0.0 }
 0xee3   :  { %4261 = vpow2.f32 %v2585_v38  ;;  %4059 = vmatpush3.msra.mxu1 %v2630_v40  ;;  %2596 = vadd.xlane.f32.xlu1 %v2595_v42 }
 0xee4   :  { %4263 = vpow2.f32 %v2587_v39  ;;  %4064 = vmatpush3.msra.mxu0 %v2706_v45  ;;  %4068 = vmatprep.subr.mxu1 %v4369_v15  ;;  %v4192_v39 = vld [vmem:[%s5002_s2 + $0x30] ss:$8 sps:$4 sm:$0xff]  }
 0xee5   :  { %v4256_v36 = vpop.eup %4255  ;;  %4073 = vmatprep.subr.mxu0 %v4369_v15 }
 0xee6   :  { %v4258_v44 = vpop.eup %4257  ;;  %v2601_v41 = vsel %vm195_vm2, %v4256_v36, 0.0  ;;  %v2782_v52 = vpop.permute.xlu1 %2781 }
 0xee7   :  { %2602 = vadd.xlane.f32.xlu1 %v2601_v41  ;;  %v2598_v46 = vsel %vm195_vm2, %v4258_v44, 0.0  ;;  %v3010_v53 = vpop.permute.xlu0 %3009 }
 0xee8   :  { %2599 = vadd.xlane.f32.xlu0 %v2598_v46 }
 0xee9   :  { %v4260_v48 = vpop.eup %4259 }
 0xeea   :  { %v2604_v49 = vsel %vm195_vm2, %v4260_v48, 0.0  ;;  %v2858_v54 = vpop.permute.xlu1 %2857 }
 0xeec   :  { %2605 = vadd.xlane.f32.xlu0 %v2604_v49 }
 0xeed   :  { %v4872_v31 = vpop.eup %4261 }
 0xeee   :  { %v4874_v32 = vpop.eup %4263  ;;  %v2607_v50 = vsel %vm195_vm2, %v4872_v31, 0.0  ;;  %v2934_v56 = vpop.permute.xlu1 %2933 }
 0xeef   :  { %2608 = vadd.xlane.f32.xlu1 %v2607_v50  ;;  %v2610_v51 = vsel %vm195_vm2, %v4874_v32, 0.0 }
 0xef0   :  { %2611 = vadd.xlane.f32.xlu0 %v2610_v51 }
 0xf00   :  { %3085 = vrot.lane.b32.xlu1 %v4776_v26, %s4375_s1 }
 0xf04   :  { %3287 = vrot.lane.b32.xlu1 %v4191_v19, %s4376_s8 }
 0xf06   :  { %3161 = vrot.lane.b32.xlu0 %v4774_v47, %s4375_s1 }
 0xf17   :  { %v2594_v55 = vpop.xlane.xlu0 %2593 }
 0xf18   :  { %4265 = vrcp.f32 %v2594_v55 }
 0xf1f   :  { %v2591_v57 = vpop.xlane.xlu1 %2590 }
 0xf20   :  { %4267 = vrcp.f32 %v2591_v57 }
 0xf22   :  { %v4266_v58 = vpop.eup %4265 }
 0xf23   :  { %v2622_v59 = vmul.f32 %v4266_v58, %v4858_v11 }
 0xf25   :  { %4066 = vmatmul.mubr.msk.f32.vlgmr.msra.gmra.mrb[36].mxu0 %vm195_vm2, %v2622_v59 }
 0xf26   :  { %4074 = vmatpush3.msra.mxu0 %v2858_v54  ;;  %4075 = vmatprep.mubr.msk.f32.mxu0 %vm4370_vm1, %v4369_v15 }
 0xf27   :  { %4083 = vmatprep.subr.mxu0 %v4369_v15 }
 0xf2a   :  { %v4268_v47 = vpop.eup %4267 }
 0xf2b   :  { %v2621_v26 = vmul.f32 %v4268_v47, %v4862_v16  ;;  %v3761_v47 = vld [vmem:[#allocation5 + $0x9] ss:$0 sm:$0xff] }
 0xf2d   :  { %4061 = vmatmul.mubr.msk.f32.vlgmr.msra.gmra.mrb[32].mxu1 %vm195_vm2, %v2621_v26 }
 0xf2e   :  { %4069 = vmatpush3.msra.mxu1 %v2782_v52  ;;  %4070 = vmatprep.mubr.msk.f32.mxu1 %vm4370_vm1, %v4369_v15 }
 0xf2f   :  { %4078 = vmatprep.subr.mxu1 %v4369_v15 }
 0xf70   :  { %v2597_v60 = vpop.xlane.xlu1 %2596 }
 0xf71   :  { %4269 = vrcp.f32 %v2597_v60 }
 0xf74   :  { %v2603_v62 = vpop.xlane.xlu1 %2602 }
 0xf75   :  { %4271 = vrcp.f32 %v2603_v62  ;;  %v2600_v63 = vpop.xlane.xlu0 %2599 }
 0xf76   :  { %4273 = vrcp.f32 %v2600_v63 }
 0xf79   :  { %v2606_v0 = vpop.xlane.xlu0 %2605 }
 0xf7a   :  { %4275 = vrcp.f32 %v2606_v0 }
 0xf7b   :  { %v4270_v1 = vpop.eup %4269 }
 0xf7c   :  { %v2623_v2 = vmul.f32 %v4270_v1, %v4254_v37  ;;  %v2609_v4 = vpop.xlane.xlu1 %2608 }
 0xf7d   :  { %4277 = vrcp.f32 %v2609_v4  ;;  %v2612_v5 = vpop.xlane.xlu0 %2611 }
 0xf7e   :  { %4279 = vrcp.f32 %v2612_v5  ;;  %4071 = vmatmul.mubr.msk.f32.vlgmr.msra.gmra.mrb[34].mxu1 %vm195_vm2, %v2623_v2 }
 0xf7f   :  { %v4272_v6 = vpop.eup %4271  ;;  %4079 = vmatpush3.msra.mxu1 %v2934_v56  ;;  %4080 = vmatprep.mubr.msk.f32.mxu1 %vm4370_vm1, %v4369_v15 }
 0xf80   :  { %v4274_v61 = vpop.eup %4273  ;;  %v2625_v3 = vmul.f32 %v4272_v6, %v4256_v36  ;;  %v3086_v7 = vpop.permute.xlu1 %3085  ;;  %4088 = vmatprep.subr.mxu1 %v4369_v15 }
 0xf81   :  { %v2624_v8 = vmul.f32 %v4274_v61, %v4258_v44  ;;  %v3162_v14 = vpop.permute.xlu0 %3161 }
 0xf82   :  { %4081 = vmatmul.mubr.msk.f32.vlgmr.msra.gmra.mrb[36].mxu1 %vm195_vm2, %v2625_v3 }
 0xf83   :  { %4076 = vmatmul.mubr.msk.f32.vlgmr.msra.gmra.mrb[38].mxu0 %vm195_vm2, %v2624_v8  ;;  %4089 = vmatpush3.msra.mxu1 %v3086_v7 }
 0xf84   :  { %v4276_v9 = vpop.eup %4275  ;;  %4084 = vmatpush3.msra.mxu0 %v3010_v53  ;;  %4085 = vmatprep.mubr.msk.f32.mxu0 %vm4370_vm1, %v4369_v15  ;;  %v3288_v24 = vpop.permute.xlu1 %3287 }
 0xf85   :  { %v2626_v10 = vmul.f32 %v4276_v9, %v4260_v48  ;;  %4093 = vmatprep.subr.mxu0 %v4369_v15  ;;  %4090 = vmatprep.mubr.msk.f32.mxu1 %vm4370_vm1, %v4369_v15 }
 0xf86   :  { %4098 = vmatprep.subr.bf16.mxu1 %v4369_v15 }
 0xf87   :  { %v4278_v11 = vpop.eup %4277  ;;  %4086 = vmatmul.mubr.msk.f32.vlgmr.msra.gmra.mrb[40].mxu0 %vm195_vm2, %v2626_v10 }
 0xf88   :  { %v4280_v16 = vpop.eup %4279  ;;  %v2627_v17 = vmul.f32 %v4278_v11, %v4872_v31  ;;  %4094 = vmatpush3.msra.mxu0 %v3162_v14  ;;  %4095 = vmatprep.mubr.msk.f32.mxu0 %vm4370_vm1, %v4369_v15 }
 0xf89   :  { %v2628_v18 = vmul.f32 %v4280_v16, %v4874_v32  ;;  %4106 = vmatprep.subr.bf16.mxu0 %v4369_v15 }
 0xf8a   :  { %4091 = vmatmul.mubr.msk.f32.vlgmr.msra.gmra.mrb[38].mxu1 %vm195_vm2, %v2627_v17  ;;  %v4194_v17 = vld [vmem:[%s5002_s2 + $0x34] ss:$8 sps:$4 sm:$0xff]  }
 0xf8b   :  { %4096 = vmatmul.mubr.msk.f32.vlgmr.msra.gmra.mrb[42].mxu0 %vm195_vm2, %v2628_v18  ;;  %4102 = vmatprep.mubr.msk.bf16.mxu1 %vm4370_vm1, %v4369_v15 }
 0xf8c   :  { %4110 = vmatprep.mubr.msk.bf16.mxu0 %vm4370_vm1, %v4369_v15  ;;  %4099 = vmatpush3.bf16.msra.mxu1 %v3288_v24 }
 0xf8d   :  { %4100 = vmatprep.subr.bf16.mxu1 %v4369_v15 }
 0xff8   :  { %v2777_v20 = vpop.f32.mrb[36].mxu0 }
 0xff9   :  { %v4067_v21 = vpop.f32.mrb[37].mxu0 }
0x1000   :  { %v2701_v22 = vpop.f32.mrb[32].mxu1 }
0x1001   :  { %v4062_v23 = vpop.f32.mrb[33].mxu1 }
0x1051   :  { %v2853_v25 = vpop.f32.mrb[34].mxu1 }
0x1052   :  { %v4072_v43 = vpop.f32.mrb[35].mxu1 }
0x1053   :  { %v3765_v43 = vld [vmem:[#allocation5 + $0xc] ss:$0 sm:$0xff] }
0x1055   :  { %v3005_v27 = vpop.f32.mrb[36].mxu1 }
0x1056   :  { %v2929_v28 = vpop.f32.mrb[38].mxu0  ;;  %v4082_v29 = vpop.f32.mrb[37].mxu1 }
0x1057   :  { %v4164_v30 = vpack.i.bf16 %v2929_v28, %v2853_v25  ;;  %v4077_v33 = vpop.f32.mrb[39].mxu0 }
0x1059   :  { %4165 = vrot.lane.b32.xlu0 %v4164_v30, %s4367_s29  ;;  %v3766_v30 = vld [vmem:[#allocation5 + $0xd] ss:$0 sm:$0xff] }
0x105a   :  { %v3081_v34 = vpop.f32.mrb[40].mxu0 }
0x105b   :  { %v4169_v35 = vpack.i.bf16 %v3081_v34, %v3005_v27  ;;  %v4087_v37 = vpop.f32.mrb[41].mxu0 }
0x105d   :  { %4170 = vrot.lane.b32.xlu1 %v4169_v35, %s4377_s9  ;;  %v3157_v38 = vpop.f32.mrb[38].mxu1 }
0x105e   :  { %v3233_v40 = vpop.f32.mrb[42].mxu0  ;;  %v4092_v45 = vpop.f32.mrb[39].mxu1 }
0x105f   :  { %v4174_v42 = vpack.i.bf16 %v3233_v40, %v3157_v38  ;;  %v4097_v36 = vpop.f32.mrb[43].mxu0  ;;  %v4195_v38 = vld [vmem:[%s5003_s3 + $0x20] sm:$0xff]   ;;  %v4197_v40 = vld [vmem:[%s5003_s3 + $0x30] sm:$0xff]   ;;  %v4198_v45 = vld [vmem:[%s5003_s3 + $0x38] sm:$0xff]  }
0x1061   :  { %4175 = vrot.lane.b32.xlu0 %v4174_v42, %s4378_s12  ;;  %3289 = vrot.lane.b32.xlu1 %v4192_v39, %s4376_s8  ;;  %v4196_v39 = vld [vmem:[%s5003_s3 + $0x28] sm:$0xff]   ;;  %v3771_v42 = vld [vmem:[#allocation5 + $0xa] ss:$0 sm:$0xff] }
0x10cb   :  { %v4166_v44 = vpop.permute.xlu0 %4165 }
0x10cc   :  { %v4168_v46 = vunpack.i.h.bf16 %v4166_v44  ;;  %v4167_v48 = vunpack.i.l.bf16 %v4166_v44 }
0x10ce   :  { %v3262_v51 = vsel %vm195_vm2, %v2777_v20, %v4168_v46  ;;  %v3261_v52 = vsel %vm195_vm2, %v2701_v22, %v4167_v48 }
0x10cf   :  { %v4171_v41 = vpop.permute.xlu1 %4170 }
0x10d0   :  { %v4173_v49 = vunpack.i.h.bf16 %v4171_v41  ;;  %v4172_v31 = vunpack.i.l.bf16 %v4171_v41 }
0x10d2   :  { %v3264_v55 = vsel %vm1524_vm5, %v3262_v51, %v4173_v49  ;;  %v3263_v56 = vsel %vm1524_vm5, %v3261_v52, %v4172_v31 }
0x10d3   :  { %v4176_v32 = vpop.permute.xlu0 %4175  ;;  %v3290_v50 = vpop.permute.xlu1 %3289 }
0x10d4   :  { %v4178_v53 = vunpack.i.h.bf16 %v4176_v32  ;;  %v4177_v54 = vunpack.i.l.bf16 %v4176_v32  ;;  %4101 = vmatpush3.bf16.msra.mxu1 %v3290_v50 }
0x10d5   :  { %4114 = vmatprep.subr.bf16.mxu1 %v4369_v15 }
0x10d6   :  { %v3266_v57 = vsel %vm1527_vm6, %v3264_v55, %v4178_v53  ;;  %v3265_v58 = vsel %vm1527_vm6, %v3263_v56, %v4177_v54 }
0x10d7   :  { %v3267_v59 = vpack.c.bf16 %v3266_v57, %v3265_v58 }
0x10d9   :  { %4103 = vmatmul.mubr.msk.bf16.vlgmr.msra.gmra.mrb[40].mxu1 %vm61_vm0, %v3267_v59 }
0x10da   :  { %4122 = vmatprep.mubr.msk.bf16.mxu1 %vm4370_vm1, %v4369_v15  ;;  %4115 = vmatpush3.bf16.msra.mxu1 %v4195_v38 }
0x10db   :  { %4116 = vmatprep.subr.bf16.mxu1 %v4369_v15 }
0x10de   :  { %4117 = vmatpush3.bf16.msra.mxu1 %v4196_v39 }
0x10df   :  { %4118 = vmatprep.subr.bf16.mxu1 %v4369_v15 }
0x10e2   :  { %4119 = vmatpush3.bf16.msra.mxu1 %v4197_v40  ;;  %v3790_v40 = vld [vmem:[#allocation5 + $0xf] ss:$0 sm:$0xff] }
0x10e3   :  { %4120 = vmatprep.subr.bf16.mxu1 %v4369_v15 }
0x10e6   :  { %4121 = vmatpush3.bf16.msra.mxu1 %v4198_v45 }
0x11ac   :  { %v3330_v26 = vpop.f32.mrb[40].mxu1 }
0x11ad   :  { %v3331_v60 = vadd.f32 %v3761_v47, %v3330_v26  ;;  %v4104_v62 = vpop.f32.mrb[41].mxu1 }
0x11ae   :  { %v3333_v63 = vpop.f32.mrb[42].mxu1 }
0x11af   :  { %v3334_v0 = vadd.f32 %v3761_v47, %v3333_v63  ;;  %v4105_v1 = vpop.f32.mrb[43].mxu1  ;;  %v3337_v2 = vadd.f32 %v3331_v60, %v4729_v12 }
0x11b1   :  { %v3338_v4 = vadd.f32 %v3334_v0, %v4731_v13  ;;  %v3341_v5 = vsel %vm61_vm0, %v3337_v2, 0.0  ;;  %v4193_v13 = vld [vmem:[%s5002_s2 + $0x24] ss:$8 sps:$4 sm:$0xff]  }
0x11b2   :  { %3342 = vadd.xlane.f32.xlu0 %v3341_v5  ;;  %4107 = vmatpush3.bf16.msra.mxu0 %v4193_v13 }
0x11b3   :  { %v3344_v6 = vsel %vm61_vm0, %v3338_v4, 0.0  ;;  %4108 = vmatprep.subr.bf16.mxu0 %v4369_v15 }
0x11b4   :  { %3345 = vadd.xlane.f32.xlu1 %v3344_v6 }
0x11b6   :  { %4109 = vmatpush3.bf16.msra.mxu0 %v4194_v17 }
0x11b7   :  { %4126 = vmatprep.subr.bf16.mxu0 %v4369_v15 }
0x123f   :  { %v3343_v61 = vpop.xlane.xlu0 %3342 }
0x1240   :  { %v3347_v3 = vmul.f32 0.03125, %v3343_v61 }
0x1241   :  { %v3346_v7 = vpop.xlane.xlu1 %3345 }
0x1242   :  { %v3349_v8 = vsub.f32 %v3337_v2, %v3347_v3  ;;  %v3348_v9 = vmul.f32 0.03125, %v3346_v7  ;;  %v3783_v2 = vld [vmem:[#allocation5 + $0xb] ss:$0 sm:$0xff] }
0x1244   :  { %v3350_v10 = vsub.f32 %v3338_v4, %v3348_v9  ;;  %v3351_v11 = vmul.f32 %v3349_v8, %v3349_v8 }
0x1246   :  { %v3353_v14 = vsel %vm61_vm0, %v3351_v11, 0.0  ;;  %v3352_v16 = vmul.f32 %v3350_v10, %v3350_v10 }
0x1247   :  { %3354 = vadd.xlane.f32.xlu0 %v3353_v14 }
0x1248   :  { %v3356_v12 = vsel %vm61_vm0, %v3352_v16, 0.0 }
0x124b   :  { %3357 = vadd.xlane.f32.xlu0 %v3356_v12 }
0x12d4   :  { %v3355_v18 = vpop.xlane.xlu0 %3354 }
0x12d5   :  { %v3359_v19 = vmul.f32 0.03125, %v3355_v18 }
0x12d7   :  { %v3361_v20 = vadd.f32 1e-12, %v3359_v19 }
0x12d8   :  { %v3358_v21 = vpop.xlane.xlu0 %3357 }
0x12d9   :  { %4281 = vrsqrt.f32 %v3361_v20  ;;  %v3360_v22 = vmul.f32 0.03125, %v3358_v21 }
0x12db   :  { %v3362_v23 = vadd.f32 1e-12, %v3360_v22 }
0x12dd   :  { %4283 = vrsqrt.f32 %v3362_v23  ;;  %v4199_v23 = vld [vmem:[%s5002_s2 + $0x40] ss:$8 sps:$4 sm:$0xff]  }
0x12e3   :  { %v4282_v24 = vpop.eup %4281 }
0x12e4   :  { %v3365_v25 = vmul.f32 %v4282_v24, %v3349_v8  ;;  %v4200_v24 = vld [vmem:[%s5002_s2 + $0x50] ss:$8 sps:$4 sm:$0xff]   ;;  %s4379_s2 = smov [#allocation7]  }
0x12e5   :  { %s3664_s20 = sshll.u32 %s4379_s2, 4  ;;  %s3665_s20 = int_to_ptr.vmem [resolvable:$true] %s3664_s20 }
0x12e6   :  { %v3371_v28 = vmul.f32 %v3765_v43, %v3365_v25  ;;  %s4337_s25 = scalar_lea.vmem %s3665_s20, 256  ;;  %p4342_p3 = scmp.lt.s32.totalorder %s3665_s20, %s3665_s20 }
0x12e7   :  { %v4284_v27 = vpop.eup %4283  ;;  %p4338_p2 = scmp.ne.s32.totalorder %s3665_s20, %s4337_s25  ;;  %p4343_p4 = scmp.lt.s32.totalorder %s4337_s25, %s4337_s25 }
0x12e8   :  { %v3366_v29 = vmul.f32 %v4284_v27, %v3350_v10  ;;  %v3377_v34 = vadd.f32 %v3766_v30, %v3371_v28 }
0x12e9   :  { %p4344_p5 = por %p4343_p4, %p4342_p3 }
0x12ea   :  { %v3372_v33 = vmul.f32 %v3765_v43, %v3366_v29 }
0x12eb   :  { %p4345_p6 = pnand %p4344_p5, %p4338_p2 }
0x12ec   :  { %v3378_v35 = vadd.f32 %v3766_v30, %v3372_v33 }
0x12ee   :  { %v3379_v37 = vpack.c.bf16 %v3378_v35, %v3377_v34 }
0x12f0   :  { %4111 = vmatmul.mubr.msk.bf16.vlgmr.msra.gmra.mrb[44].mxu0 %vm61_vm0, %v3379_v37 }
0x12f1   :  { %4130 = vmatprep.mubr.msk.bf16.mxu0 %vm4370_vm1, %v4369_v15  ;;  %4127 = vmatpush3.bf16.msra.mxu0 %v4199_v23 }
0x12f2   :  { %4128 = vmatprep.subr.bf16.mxu0 %v4369_v15 }
0x12f5   :  { %4129 = vmatpush3.bf16.msra.mxu0 %v4200_v24 }
0x13c3   :  { %v3438_v36 = vpop.f32.mrb[44].mxu0 }
0x13c4   :  { %v3439_v44 = vadd.f32 %v3771_v42, %v3438_v36  ;;  %v4112_v41 = vpop.f32.mrb[45].mxu0 }
0x13c5   :  { %v3441_v46 = vpop.f32.mrb[46].mxu0 }
0x13c6   :  { %v3447_v48 = vmul.f32 0.044715, %v3439_v44  ;;  %v3442_v49 = vadd.f32 %v3771_v42, %v3441_v46  ;;  %v4113_v31 = vpop.f32.mrb[47].mxu0  ;;  %v3445_v26 = vmul.f32 0.5, %v3439_v44 }
0x13c8   :  { %v3449_v32 = vmul.f32 %v3447_v48, %v3439_v44  ;;  %v3448_v50 = vmul.f32 0.044715, %v3442_v49  ;;  %v3446_v60 = vmul.f32 0.5, %v3442_v49 }
0x13ca   :  { %v3451_v51 = vmul.f32 %v3449_v32, %v3439_v44  ;;  %v3450_v52 = vmul.f32 %v3448_v50, %v3442_v49 }
0x13cc   :  { %v3453_v53 = vadd.f32 %v3451_v51, %v3439_v44  ;;  %v3452_v54 = vmul.f32 %v3450_v52, %v3442_v49  ;;  %v3795_v44 = vld [vmem:[#allocation5 + $0x12] ss:$0 sm:$0xff] }
0x13ce   :  { %v3455_v55 = vmul.f32 0.7978846, %v3453_v53  ;;  %v3454_v56 = vadd.f32 %v3452_v54, %v3442_v49 }
0x13d0   :  { %4285 = vtanh.f32 %v3455_v55  ;;  %v3456_v57 = vmul.f32 0.7978846, %v3454_v56 }
0x13d2   :  { %4287 = vtanh.f32 %v3456_v57 }
0x13da   :  { %v4286_v58 = vpop.eup %4285 }
0x13db   :  { %v3459_v59 = vadd.f32 1.0, %v4286_v58 }
0x13dc   :  { %v4288_v47 = vpop.eup %4287 }
0x13dd   :  { %v3460_v62 = vadd.f32 1.0, %v4288_v47  ;;  %v3461_v63 = vmul.f32 %v3459_v59, %v3445_v26 }
0x13df   :  { %v3462_v0 = vmul.f32 %v3460_v62, %v3446_v60 }
0x13e1   :  { %v3463_v1 = vpack.c.bf16 %v3462_v0, %v3461_v63 }
0x13e3   :  { %4123 = vmatmul.mubr.msk.bf16.vlgmr.msra.gmra.mrb[44].mxu1 %vm1764_vm7, %v3463_v1 }
0x14b6   :  { %v3539_v4 = vpop.f32.mrb[44].mxu1 }
0x14b7   :  { %v3540_v5 = vadd.f32 %v3783_v2, %v3539_v4  ;;  %v4124_v6 = vpop.f32.mrb[45].mxu1 }
0x14b8   :  { %v3542_v61 = vpop.f32.mrb[46].mxu1 }
0x14b9   :  { %v3546_v3 = vadd.f32 %v3540_v5, %v3377_v34  ;;  %v3543_v7 = vadd.f32 %v3783_v2, %v3542_v61  ;;  %v4125_v8 = vpop.f32.mrb[47].mxu1  ;;  %v3789_v34 = vld [vmem:[#allocation5 + $0xe] ss:$0 sm:$0xff] }
0x14bb   :  { %v3547_v9 = vadd.f32 %v3543_v7, %v3378_v35  ;;  %v3550_v10 = vsel %vm61_vm0, %v3546_v3, 0.0 }
0x14bc   :  { %3551 = vadd.xlane.f32.xlu0 %v3550_v10 }
0x14bd   :  { %v3553_v11 = vsel %vm61_vm0, %v3547_v9, 0.0 }
0x14be   :  { %3554 = vadd.xlane.f32.xlu1 %v3553_v11 }
0x1549   :  { %v3552_v14 = vpop.xlane.xlu0 %3551 }
0x154a   :  { %v3556_v16 = vmul.f32 0.03125, %v3552_v14 }
0x154b   :  { %v3555_v12 = vpop.xlane.xlu1 %3554 }
0x154c   :  { %v3558_v13 = vsub.f32 %v3546_v3, %v3556_v16  ;;  %v3557_v17 = vmul.f32 0.03125, %v3555_v12 }
0x154e   :  { %v3559_v18 = vsub.f32 %v3547_v9, %v3557_v17  ;;  %v3560_v19 = vmul.f32 %v3558_v13, %v3558_v13 }
0x1550   :  { %v3562_v20 = vsel %vm61_vm0, %v3560_v19, 0.0  ;;  %v3561_v21 = vmul.f32 %v3559_v18, %v3559_v18 }
0x1551   :  { %3563 = vadd.xlane.f32.xlu0 %v3562_v20 }
0x1552   :  { %v3565_v22 = vsel %vm61_vm0, %v3561_v21, 0.0 }
0x1553   :  { %3566 = vadd.xlane.f32.xlu1 %v3565_v22 }
0x15de   :  { %v3564_v25 = vpop.xlane.xlu0 %3563 }
0x15df   :  { %v3568_v43 = vmul.f32 0.03125, %v3564_v25 }
0x15e0   :  { %v3567_v27 = vpop.xlane.xlu1 %3566 }
0x15e1   :  { %v3570_v28 = vadd.f32 1e-12, %v3568_v43  ;;  %v3569_v29 = vmul.f32 0.03125, %v3567_v27 }
0x15e3   :  { %4289 = vrsqrt.f32 %v3570_v28  ;;  %v3571_v30 = vadd.f32 1e-12, %v3569_v29 }
0x15e5   :  { %4291 = vrsqrt.f32 %v3571_v30 }
0x15ed   :  { %v4290_v33 = vpop.eup %4289 }
0x15ee   :  { %v3574_v35 = vmul.f32 %v4290_v33, %v3558_v13 }
0x15ef   :  { %v4292_v37 = vpop.eup %4291 }
0x15f0   :  { %v3580_v38 = vmul.f32 %v3789_v34, %v3574_v35  ;;  %v3575_v39 = vmul.f32 %v4292_v37, %v3559_v18 }
0x15f2   :  { %v3581_v45 = vmul.f32 %v3789_v34, %v3575_v39  ;;  %v3586_v42 = vadd.f32 %v3790_v40, %v3580_v38 }
0x15f4   :  { %v3587_v36 = vadd.f32 %v3790_v40, %v3581_v45 }
0x15f6   :  { %v3588_v15 = vpack.c.bf16 %v3587_v36, %v3586_v42 }
0x15f8   :  { %4131 = vmatmul.mubr.msk.bf16.vlgmr.msra.gmra.mrb[48].mxu0 %vm61_vm0, %v3588_v15 }
0x16cb   :  { %v3648_v41 = vpop.f32.mrb[48].mxu0 }
0x16cc   :  { %v3649_v46 = vadd.f32 %v3795_v44, %v3648_v41  ;;  %v4132_v48 = vpop.f32.mrb[49].mxu0 }
0x16cd   :  { %v3651_v49 = vpop.f32.mrb[50].mxu0 }
0x16ce   :  { %v3655_v31 = vmax.f32 %v3649_v46, 0.0  ;;  %v3652_v32 = vadd.f32 %v3795_v44, %v3651_v49  ;;  %v4133_v50 = vpop.f32.mrb[51].mxu0 }
0x16d0   :  { %3657 = vst [vmem:[#allocation7] sm:$0xff] %v3655_v31  ;;  %v3656_v51 = vmax.f32 %v3652_v32, 0.0 }
0x16d2   :  { %3658 = vst [vmem:[#allocation7 + $0x8] sm:$0xff] %v3656_v51 }
0x16d3   :  { %4348 = shalt.err (!%p4345_p6)
}
0x16d4   :  { %s4349_s30 = scalar_lea.hbm %s5005_s5, 256 }
0x16d5   :  { %p4350_p7 = scmp.ne.s32.totalorder %s5005_s5, %s4349_s30  ;;  %p4353_p8 = scmp.lt.u32.totalorder %s4349_s30, %s5005_s5 }
0x16d7   :  { %p4355_p9 = pnand %p4353_p8, %p4350_p7 }
0x16d9   :  { %4358 = shalt.err (!%p4355_p9)
}
0x16da   :  { %3670 = dma.vmem_to_hbm [thread:$0]  %s3665_s20, 256, %s5005_s5, [#allocation4], %s4366_s28, %s4366_s28, %s4367_s29  }
0x16db   :  { %4363 = dma.done.wait [#allocation4], 256  }
0x16dc   :  { %4364 = vsyncadd [#allocation4], 4294967040 }
0x16dd   :  { %3674 = vsyncpa [#allocation3], 1 }
0x16de   :  { %3675 = vsyncpa [#allocation6], 1 }
0x16df   :  { %3676 = vsyncpa [#allocation4], 1 }

</bundles_post_ra>
